<compile_context>
chip_gen: v7x
topology: tpu7x:2x2x1
jax: 0.10.0
libtpu: 0.0.40
codegen_flags: <defaults>
</compile_context>

<pallas_src>
import functools
import math

import jax
import jax.numpy as jnp
import numpy as np
from jax.experimental import pallas as pl
from jax.experimental.pallas import tpu as pltpu

BN_EPS = 1e-5
G = 8              # samples packed per 128-lane group
C1 = 16            # conv channel width (fixed by the module)
FC1_OUT = 32       # classifier hidden width (fixed by the module)
LANES_H = G * C1       # 128 lanes for conv/pool activations
LANES_O = G * FC1_OUT  # 256 lanes for the fc1 activations


def cnn_easy_kernel(L, tbg, x_ref, w1_ref, w2_ref, w3_ref, fc2_ref,
                    consts_ref, out_ref):
    """One batch tile of tbg groups (tbg*8 samples).

    x_ref  : (tbg*L, 3*G*Cin)  host-im2col'd conv1 input, row = l*tbg + g,
                               lane = tap*G*Cin + sample*Cin + cin.
    h1/h2  : (tbg*L, 128)      lane = sample*16 + channel.
    """
    rows = tbg * L
    consts = consts_ref[...]                              # (8, 256) packed constants
    b1 = consts[0:1, 0:LANES_H]
    b2 = consts[1:2, 0:LANES_H]
    bn_scale = consts[2:3, 0:LANES_H]
    bn_shift = consts[3:4, 0:LANES_H]
    fc1b = consts[4:5, :]
    fc2b = consts[5:6, 0:1]

    # ---- Conv1d(4 -> 16, k=3, pad=1) + ReLU : one block-diagonal matmul ----
    h1 = jnp.dot(x_ref[...], w1_ref[...],
                 preferred_element_type=jnp.float32) + b1
    h1 = jnp.maximum(h1, 0.0)                             # (rows, 128)

    # ---- Conv1d(16 -> 16, k=3, pad=1) + ReLU : taps via sublane roll ----
    # position-major rows: neighbour position l+-1 is +-tbg rows away.
    row_id = jax.lax.broadcasted_iota(jnp.int32, (rows, 1), 0)
    prev = jnp.where(row_id < tbg, 0.0, jnp.roll(h1, tbg, axis=0))
    nxt = jnp.where(row_id >= (L - 1) * tbg, 0.0, jnp.roll(h1, -tbg, axis=0))
    taps = jnp.concatenate([prev, h1, nxt], axis=1)       # (rows, 384), lane-aligned
    h2 = jnp.dot(taps, w2_ref[...],
                 preferred_element_type=jnp.float32) + b2
    h2 = jnp.maximum(h2, 0.0)                             # (rows, 128)

    # ---- BatchNorm1d(16), eval mode: scale/shift pre-folded on host ----
    h2 = h2 * bn_scale + bn_shift

    # ---- MaxPool1d(2) + Flatten + Linear(16*(L//2) -> 32), fused ----
    # pooled position p lives in the two contiguous row slabs l=2p and l=2p+1;
    # each contributes one (tbg,128)@(128,256) block-diagonal matmul.
    acc = None
    for p in range(L // 2):
        lo = 2 * p * tbg
        pooled = jnp.maximum(h2[lo:lo + tbg, :], h2[lo + tbg:lo + 2 * tbg, :])
        part = jnp.dot(pooled, w3_ref[p], preferred_element_type=jnp.float32)
        acc = part if acc is None else acc + part
    fc1 = jnp.maximum(acc + fc1b, 0.0)                    # (tbg, 256)

    # Dropout(0.5): identity in eval / inference mode.
    # ---- Linear(32 -> 1): block-structured matmul -> one value per sample ----
    out = jnp.dot(fc1, fc2_ref[...],
                  preferred_element_type=jnp.float32) + fc2b     # (tbg, 8)
    out_ref[...] = out[None].astype(out_ref.dtype)               # (1, tbg, 8)


def _plan_tiles(B, L, max_rows=2048, max_groups=128):
    """Pick (groups per tile, number of tiles); rows per tile = tbg*L."""
    g_align = 8 // math.gcd(L, 8)            # keeps row blocks sublane-aligned
    n_need = max(1, -(-B // G))              # 8-sample groups needed for the batch
    tbg = g_align
    while (2 * tbg * L <= max_rows           # VMEM row budget
           and 2 * tbg <= max_groups
           and 2 * tbg <= max(g_align, -(-n_need // 2))):  # keep grid >= 2
        tbg *= 2
    n_tiles = max(2, -(-n_need // tbg))      # >= 2 programs (v7x megacore, pipelining)
    return tbg, n_tiles


def cnn_easy_forward(x_ncl, params):
    """x_ncl: (B, 4, L) float32 (PyTorch NCL layout)."""
    B, cin, L = x_ncl.shape
    assert L % 2 == 0, "MaxPool1d(2) requires an even input length"

    tbg, n_tiles = _plan_tiles(B, L)
    B_pad = n_tiles * tbg * G
    rows = tbg * L

    # ---- activations: lane-packed, position-major rows, host-side im2col ----
    x_blc = jnp.transpose(x_ncl, (0, 2, 1))                       # (B, L, Cin)
    x_blc = jnp.pad(x_blc, ((0, B_pad - B), (0, 0), (0, 0)))
    xg = x_blc.reshape(n_tiles, tbg, G, L, cin)
    xg = jnp.transpose(xg, (0, 3, 1, 2, 4))                       # (tile, l, g, s, cin)
    zrow = jnp.zeros_like(xg[:, :1])
    prev = jnp.concatenate([zrow, xg[:, :-1]], axis=1)            # x[l-1] (0 at l=0)
    nxt = jnp.concatenate([xg[:, 1:], zrow], axis=1)              # x[l+1] (0 at l=L-1)
    x_taps = jnp.stack([prev, xg, nxt], axis=3)                   # (tile,l,g,k,s,cin)
    x2 = x_taps.reshape(n_tiles * rows, 3 * G * cin)              # row = (tile, l, g)

    # ---- block-diagonal weights (one 16x16 / 16x32 block per packed sample) ----
    eye = jnp.eye(G, dtype=jnp.float32)
    w1p = jnp.einsum('st,kio->ksito', eye, params['w1']).reshape(3 * G * cin, LANES_H)
    w2p = jnp.einsum('st,kio->ksito', eye, params['w2']).reshape(3 * LANES_H, LANES_H)
    fc1w = params['fc1w'].reshape(C1, L // 2, FC1_OUT)            # [c, p, j]
    w3p = jnp.einsum('st,cpj->psctj', eye, fc1w).reshape(L // 2, LANES_H, LANES_O)
    fc2p = jnp.einsum('st,j->sjt', eye, params['fc2w'][:, 0]).reshape(LANES_O, G)

    # ---- folded BN + packed small constants (one DMA) ----
    inv_std = jax.lax.rsqrt(params['var'] + BN_EPS)
    bn_scale = params['gamma'] * inv_std
    bn_shift = params['beta'] - params['mean'] * bn_scale
    consts = jnp.zeros((8, LANES_O), jnp.float32)
    consts = consts.at[0, :LANES_H].set(jnp.tile(params['b1'][0], G))
    consts = consts.at[1, :LANES_H].set(jnp.tile(params['b2'][0], G))
    consts = consts.at[2, :LANES_H].set(jnp.tile(bn_scale[0], G))
    consts = consts.at[3, :LANES_H].set(jnp.tile(bn_shift[0], G))
    consts = consts.at[4, :].set(jnp.tile(params['fc1b'][0], G))
    consts = consts.at[5, 0].set(params['fc2b'][0, 0])

    kernel = functools.partial(cnn_easy_kernel, L, tbg)
    out = pl.pallas_call(
        kernel,
        out_shape=jax.ShapeDtypeStruct((n_tiles, tbg, G), jnp.float32),
        grid_spec=pltpu.PrefetchScalarGridSpec(
            num_scalar_prefetch=0,
            grid=(n_tiles,),
            in_specs=[
                pl.BlockSpec((rows, 3 * G * cin), lambda i: (i, 0)),     # activations
                pl.BlockSpec((3 * G * cin, LANES_H), lambda i: (0, 0)),  # conv1 W
                pl.BlockSpec((3 * LANES_H, LANES_H), lambda i: (0, 0)),  # conv2 W
                pl.BlockSpec((L // 2, LANES_H, LANES_O),
                             lambda i: (0, 0, 0)),                       # fc1 W (per p)
                pl.BlockSpec((LANES_O, G), lambda i: (0, 0)),            # fc2 W
                pl.BlockSpec((8, LANES_O), lambda i: (0, 0)),            # packed consts
            ],
            out_specs=pl.BlockSpec((1, tbg, G), lambda i: (i, 0, 0)),
        ),
        compiler_params=pltpu.CompilerParams(
            dimension_semantics=("parallel",),
            vmem_limit_bytes=32 * 1024 * 1024),
    )(x2, w1p, w2p, w3p, fc2p, consts)

    return out.reshape(B_pad, 1)[:B]


def cnn_easy_reference(x_ncl, params):
    """Pure-JAX reference with identical semantics (for correctness check)."""
    x = jnp.transpose(x_ncl, (0, 2, 1))
    B, L, Cin = x.shape
    z0 = jnp.zeros((B, 1, Cin), x.dtype)
    xp = jnp.concatenate([z0, x, z0], axis=1)
    h1 = params['b1'][None]
    for k in range(3):
        h1 = h1 + jnp.einsum('blc,cd->bld', xp[:, k:k + L, :], params['w1'][k])
    h1 = jnp.maximum(h1, 0.0)
    z1 = jnp.zeros((B, 1, C1), h1.dtype)
    h1p = jnp.concatenate([z1, h1, z1], axis=1)
    h2 = params['b2'][None]
    for k in range(3):
        h2 = h2 + jnp.einsum('blc,cd->bld', h1p[:, k:k + L, :], params['w2'][k])
    h2 = jnp.maximum(h2, 0.0)
    inv_std = jax.lax.rsqrt(params['var'] + BN_EPS)
    h2 = (h2 - params['mean'][None]) * (params['gamma'] * inv_std)[None] + params['beta'][None]
    pooled = jnp.max(h2.reshape(B, L // 2, 2, C1), axis=2)
    flat = jnp.transpose(pooled, (0, 2, 1)).reshape(B, C1 * (L // 2))
    fc1 = jnp.maximum(flat @ params['fc1w'] + params['fc1b'], 0.0)
    return fc1 @ params['fc2w'] + params['fc2b']


def make_params(key, input_length):
    ks = jax.random.split(key, 8)
    f32 = jnp.float32
    hidden = C1 * (input_length // 2)
    params = {
        # conv weights stored as (K, Cin, Cout); PyTorch is (Cout, Cin, K)
        'w1': 0.1 * jax.random.normal(ks[0], (3, 4, C1), f32),
        'b1': 0.1 * jax.random.normal(ks[1], (1, C1), f32),
        'w2': 0.1 * jax.random.normal(ks[2], (3, C1, C1), f32),
        'b2': 0.1 * jax.random.normal(ks[3], (1, C1), f32),
        # BatchNorm1d(16) running stats / affine (deterministic defaults)
        'gamma': jnp.ones((1, C1), f32),
        'beta': jnp.zeros((1, C1), f32),
        'mean': jnp.zeros((1, C1), f32),
        'var': jnp.ones((1, C1), f32),
        # Linear layers: stored as (in, out); PyTorch stores (out, in)
        'fc1w': 0.1 * jax.random.normal(ks[4], (hidden, FC1_OUT), f32),
        'fc1b': 0.1 * jax.random.normal(ks[5], (1, FC1_OUT), f32),
        'fc2w': 0.1 * jax.random.normal(ks[6], (FC1_OUT, 1), f32),
        'fc2b': 0.1 * jax.random.normal(ks[7], (1, 1), f32),
    }
    return params


if __name__ == "__main__":
    key = jax.random.PRNGKey(0)
    kx, kp = jax.random.split(key)

    B, C, L = 2, 4, 16                       # input HRRP signal length = 16
    x = jax.random.normal(kx, (B, C, L), jnp.float32)
    params = make_params(kp, L)

    out = jax.block_until_ready(cnn_easy_forward(x, params))
    ref = jax.block_until_ready(cnn_easy_reference(x, params))
    np.testing.assert_allclose(np.asarray(out), np.asarray(ref),
                               rtol=1e-4, atol=1e-4)
    assert out.shape == (B, 1)
    print("KERNEL_OK")
</pallas_src>

<mosaic_0001>
module attributes {stable_mosaic.version = 11 : i64} {
  func.func @cnn_easy_kernel(%arg0: i32, %arg1: memref<16x96xf32, #tpu.memory_space<vmem>>, %arg2: memref<96x128xf32, #tpu.memory_space<vmem>>, %arg3: memref<384x128xf32, #tpu.memory_space<vmem>>, %arg4: memref<8x128x256xf32, #tpu.memory_space<vmem>>, %arg5: memref<256x8xf32, #tpu.memory_space<vmem>>, %arg6: memref<8x256xf32, #tpu.memory_space<vmem>>, %arg7: memref<1x1x8xf32, #tpu.memory_space<vmem>>) attributes {dimension_semantics = [#tpu.dimension_semantics<parallel>], iteration_bounds = array<i64: 2>, scalar_prefetch = 0 : i64, scratch_operands = 0 : i64, tpu.core_type = #tpu.core_type<tc>, window_params = [{transform_indices = @transform_0, window_bounds = array<i64: 16, 96>}, {pipeline_mode = #tpu.pipeline_mode<synchronous>, transform_indices = @transform_1, window_bounds = array<i64: 96, 128>}, {pipeline_mode = #tpu.pipeline_mode<synchronous>, transform_indices = @transform_2, window_bounds = array<i64: 384, 128>}, {pipeline_mode = #tpu.pipeline_mode<synchronous>, transform_indices = @transform_3, window_bounds = array<i64: 8, 128, 256>}, {pipeline_mode = #tpu.pipeline_mode<synchronous>, transform_indices = @transform_4, window_bounds = array<i64: 256, 8>}, {pipeline_mode = #tpu.pipeline_mode<synchronous>, transform_indices = @transform_5, window_bounds = array<i64: 8, 256>}, {transform_indices = @transform_6, window_bounds = array<i64: 1, 1, 8>}]} {
    %c0 = arith.constant 0 : index
    %c0_0 = arith.constant 0 : index
    %0 = vector.load %arg6[%c0, %c0_0] : memref<8x256xf32, #tpu.memory_space<vmem>>, vector<8x256xf32>
    %1 = vector.extract_strided_slice %0 {offsets = [0, 0], sizes = [1, 128], strides = [1, 1]} : vector<8x256xf32> to vector<1x128xf32>
    %2 = vector.extract_strided_slice %0 {offsets = [1, 0], sizes = [1, 128], strides = [1, 1]} : vector<8x256xf32> to vector<1x128xf32>
    %3 = vector.extract_strided_slice %0 {offsets = [2, 0], sizes = [1, 128], strides = [1, 1]} : vector<8x256xf32> to vector<1x128xf32>
    %4 = vector.extract_strided_slice %0 {offsets = [3, 0], sizes = [1, 128], strides = [1, 1]} : vector<8x256xf32> to vector<1x128xf32>
    %5 = vector.extract_strided_slice %0 {offsets = [4, 0], sizes = [1, 256], strides = [1, 1]} : vector<8x256xf32> to vector<1x256xf32>
    %6 = vector.extract_strided_slice %0 {offsets = [5, 0], sizes = [1, 1], strides = [1, 1]} : vector<8x256xf32> to vector<1x1xf32>
    %c0_1 = arith.constant 0 : index
    %c0_2 = arith.constant 0 : index
    %7 = vector.load %arg1[%c0_1, %c0_2] : memref<16x96xf32, #tpu.memory_space<vmem>>, vector<16x96xf32>
    %c0_3 = arith.constant 0 : index
    %c0_4 = arith.constant 0 : index
    %8 = vector.load %arg2[%c0_3, %c0_4] : memref<96x128xf32, #tpu.memory_space<vmem>>, vector<96x128xf32>
    %cst = arith.constant dense<0.000000e+00> : vector<16x128xf32>
    %9 = tpu.matmul %7, %8, %cst {dimension_numbers = #tpu.dot_dimension_numbers<[1], [0], [0], [1], [0, 0, 1, 1], [], []>} : vector<16x96xf32>, vector<96x128xf32>, vector<16x128xf32> -> vector<16x128xf32>
    %10 = vector.broadcast %1 : vector<1x128xf32> to vector<16x128xf32>
    %11 = arith.addf %9, %10 : vector<16x128xf32>
    %cst_5 = arith.constant 0.000000e+00 : f32
    %12 = vector.broadcast %cst_5 : f32 to vector<16x128xf32>
    %13 = arith.maximumf %11, %12 : vector<16x128xf32>
    %14 = tpu.iota {dimensions = array<i32: 0>} : vector<16x1xi32>
    %c1_i32 = arith.constant 1 : i32
    %15 = vector.broadcast %c1_i32 : i32 to vector<16x1xi32>
    %16 = arith.cmpi slt, %14, %15 : vector<16x1xi32>
    %17 = vector.extract_strided_slice %13 {offsets = [15, 0], sizes = [1, 128], strides = [1, 1]} : vector<16x128xf32> to vector<1x128xf32>
    %18 = vector.extract_strided_slice %13 {offsets = [0, 0], sizes = [15, 128], strides = [1, 1]} : vector<16x128xf32> to vector<15x128xf32>
    %19 = tpu.concatenate %17, %18 in 0 : vector<1x128xf32>, vector<15x128xf32> -> vector<16x128xf32>
    %cst_6 = arith.constant 0.000000e+00 : f32
    %20 = vector.shape_cast %16 : vector<16x1xi1> to vector<16x1xi1>
    %21 = vector.broadcast %20 : vector<16x1xi1> to vector<16x128xi1>
    %22 = vector.broadcast %cst_6 : f32 to vector<16x128xf32>
    %23 = arith.select %21, %22, %19 : vector<16x128xi1>, vector<16x128xf32>
    %c15_i32 = arith.constant 15 : i32
    %24 = vector.broadcast %c15_i32 : i32 to vector<16x1xi32>
    %25 = arith.cmpi sge, %14, %24 : vector<16x1xi32>
    %26 = vector.extract_strided_slice %13 {offsets = [1, 0], sizes = [15, 128], strides = [1, 1]} : vector<16x128xf32> to vector<15x128xf32>
    %27 = vector.extract_strided_slice %13 {offsets = [0, 0], sizes = [1, 128], strides = [1, 1]} : vector<16x128xf32> to vector<1x128xf32>
    %28 = tpu.concatenate %26, %27 in 0 : vector<15x128xf32>, vector<1x128xf32> -> vector<16x128xf32>
    %cst_7 = arith.constant 0.000000e+00 : f32
    %29 = vector.shape_cast %25 : vector<16x1xi1> to vector<16x1xi1>
    %30 = vector.broadcast %29 : vector<16x1xi1> to vector<16x128xi1>
    %31 = vector.broadcast %cst_7 : f32 to vector<16x128xf32>
    %32 = arith.select %30, %31, %28 : vector<16x128xi1>, vector<16x128xf32>
    %33 = tpu.concatenate %23, %13, %32 in 1 : vector<16x128xf32>, vector<16x128xf32>, vector<16x128xf32> -> vector<16x384xf32>
    %c0_8 = arith.constant 0 : index
    %c0_9 = arith.constant 0 : index
    %34 = vector.load %arg3[%c0_8, %c0_9] : memref<384x128xf32, #tpu.memory_space<vmem>>, vector<384x128xf32>
    %cst_10 = arith.constant dense<0.000000e+00> : vector<16x128xf32>
    %35 = tpu.matmul %33, %34, %cst_10 {dimension_numbers = #tpu.dot_dimension_numbers<[1], [0], [0], [1], [0, 0, 1, 1], [], []>} : vector<16x384xf32>, vector<384x128xf32>, vector<16x128xf32> -> vector<16x128xf32>
    %36 = vector.broadcast %2 : vector<1x128xf32> to vector<16x128xf32>
    %37 = arith.addf %35, %36 : vector<16x128xf32>
    %cst_11 = arith.constant 0.000000e+00 : f32
    %38 = vector.broadcast %cst_11 : f32 to vector<16x128xf32>
    %39 = arith.maximumf %37, %38 : vector<16x128xf32>
    %40 = vector.broadcast %3 : vector<1x128xf32> to vector<16x128xf32>
    %41 = arith.mulf %39, %40 : vector<16x128xf32>
    %42 = vector.broadcast %4 : vector<1x128xf32> to vector<16x128xf32>
    %43 = arith.addf %41, %42 : vector<16x128xf32>
    %44 = vector.extract_strided_slice %43 {offsets = [0, 0], sizes = [1, 128], strides = [1, 1]} : vector<16x128xf32> to vector<1x128xf32>
    %45 = vector.extract_strided_slice %43 {offsets = [1, 0], sizes = [1, 128], strides = [1, 1]} : vector<16x128xf32> to vector<1x128xf32>
    %46 = arith.maximumf %44, %45 : vector<1x128xf32>
    %c0_12 = arith.constant 0 : index
    %c0_13 = arith.constant 0 : index
    %c0_14 = arith.constant 0 : index
    %47 = vector.load %arg4[%c0_12, %c0_13, %c0_14] : memref<8x128x256xf32, #tpu.memory_space<vmem>>, vector<1x128x256xf32>
    %48 = vector.shape_cast %47 : vector<1x128x256xf32> to vector<128x256xf32>
    %cst_15 = arith.constant dense<0.000000e+00> : vector<1x256xf32>
    %49 = tpu.matmul %46, %48, %cst_15 {dimension_numbers = #tpu.dot_dimension_numbers<[1], [0], [0], [1], [0, 0, 1, 1], [], []>} : vector<1x128xf32>, vector<128x256xf32>, vector<1x256xf32> -> vector<1x256xf32>
    %50 = vector.extract_strided_slice %43 {offsets = [2, 0], sizes = [1, 128], strides = [1, 1]} : vector<16x128xf32> to vector<1x128xf32>
    %51 = vector.extract_strided_slice %43 {offsets = [3, 0], sizes = [1, 128], strides = [1, 1]} : vector<16x128xf32> to vector<1x128xf32>
    %52 = arith.maximumf %50, %51 : vector<1x128xf32>
    %c1 = arith.constant 1 : index
    %c0_16 = arith.constant 0 : index
    %c0_17 = arith.constant 0 : index
    %53 = vector.load %arg4[%c1, %c0_16, %c0_17] : memref<8x128x256xf32, #tpu.memory_space<vmem>>, vector<1x128x256xf32>
    %54 = vector.shape_cast %53 : vector<1x128x256xf32> to vector<128x256xf32>
    %cst_18 = arith.constant dense<0.000000e+00> : vector<1x256xf32>
    %55 = tpu.matmul %52, %54, %cst_18 {dimension_numbers = #tpu.dot_dimension_numbers<[1], [0], [0], [1], [0, 0, 1, 1], [], []>} : vector<1x128xf32>, vector<128x256xf32>, vector<1x256xf32> -> vector<1x256xf32>
    %56 = arith.addf %49, %55 : vector<1x256xf32>
    %57 = vector.extract_strided_slice %43 {offsets = [4, 0], sizes = [1, 128], strides = [1, 1]} : vector<16x128xf32> to vector<1x128xf32>
    %58 = vector.extract_strided_slice %43 {offsets = [5, 0], sizes = [1, 128], strides = [1, 1]} : vector<16x128xf32> to vector<1x128xf32>
    %59 = arith.maximumf %57, %58 : vector<1x128xf32>
    %c2 = arith.constant 2 : index
    %c0_19 = arith.constant 0 : index
    %c0_20 = arith.constant 0 : index
    %60 = vector.load %arg4[%c2, %c0_19, %c0_20] : memref<8x128x256xf32, #tpu.memory_space<vmem>>, vector<1x128x256xf32>
    %61 = vector.shape_cast %60 : vector<1x128x256xf32> to vector<128x256xf32>
    %cst_21 = arith.constant dense<0.000000e+00> : vector<1x256xf32>
    %62 = tpu.matmul %59, %61, %cst_21 {dimension_numbers = #tpu.dot_dimension_numbers<[1], [0], [0], [1], [0, 0, 1, 1], [], []>} : vector<1x128xf32>, vector<128x256xf32>, vector<1x256xf32> -> vector<1x256xf32>
    %63 = arith.addf %56, %62 : vector<1x256xf32>
    %64 = vector.extract_strided_slice %43 {offsets = [6, 0], sizes = [1, 128], strides = [1, 1]} : vector<16x128xf32> to vector<1x128xf32>
    %65 = vector.extract_strided_slice %43 {offsets = [7, 0], sizes = [1, 128], strides = [1, 1]} : vector<16x128xf32> to vector<1x128xf32>
    %66 = arith.maximumf %64, %65 : vector<1x128xf32>
    %c3 = arith.constant 3 : index
    %c0_22 = arith.constant 0 : index
    %c0_23 = arith.constant 0 : index
    %67 = vector.load %arg4[%c3, %c0_22, %c0_23] : memref<8x128x256xf32, #tpu.memory_space<vmem>>, vector<1x128x256xf32>
    %68 = vector.shape_cast %67 : vector<1x128x256xf32> to vector<128x256xf32>
    %cst_24 = arith.constant dense<0.000000e+00> : vector<1x256xf32>
    %69 = tpu.matmul %66, %68, %cst_24 {dimension_numbers = #tpu.dot_dimension_numbers<[1], [0], [0], [1], [0, 0, 1, 1], [], []>} : vector<1x128xf32>, vector<128x256xf32>, vector<1x256xf32> -> vector<1x256xf32>
    %70 = arith.addf %63, %69 : vector<1x256xf32>
    %71 = vector.extract_strided_slice %43 {offsets = [8, 0], sizes = [1, 128], strides = [1, 1]} : vector<16x128xf32> to vector<1x128xf32>
    %72 = vector.extract_strided_slice %43 {offsets = [9, 0], sizes = [1, 128], strides = [1, 1]} : vector<16x128xf32> to vector<1x128xf32>
    %73 = arith.maximumf %71, %72 : vector<1x128xf32>
    %c4 = arith.constant 4 : index
    %c0_25 = arith.constant 0 : index
    %c0_26 = arith.constant 0 : index
    %74 = vector.load %arg4[%c4, %c0_25, %c0_26] : memref<8x128x256xf32, #tpu.memory_space<vmem>>, vector<1x128x256xf32>
    %75 = vector.shape_cast %74 : vector<1x128x256xf32> to vector<128x256xf32>
    %cst_27 = arith.constant dense<0.000000e+00> : vector<1x256xf32>
    %76 = tpu.matmul %73, %75, %cst_27 {dimension_numbers = #tpu.dot_dimension_numbers<[1], [0], [0], [1], [0, 0, 1, 1], [], []>} : vector<1x128xf32>, vector<128x256xf32>, vector<1x256xf32> -> vector<1x256xf32>
    %77 = arith.addf %70, %76 : vector<1x256xf32>
    %78 = vector.extract_strided_slice %43 {offsets = [10, 0], sizes = [1, 128], strides = [1, 1]} : vector<16x128xf32> to vector<1x128xf32>
    %79 = vector.extract_strided_slice %43 {offsets = [11, 0], sizes = [1, 128], strides = [1, 1]} : vector<16x128xf32> to vector<1x128xf32>
    %80 = arith.maximumf %78, %79 : vector<1x128xf32>
    %c5 = arith.constant 5 : index
    %c0_28 = arith.constant 0 : index
    %c0_29 = arith.constant 0 : index
    %81 = vector.load %arg4[%c5, %c0_28, %c0_29] : memref<8x128x256xf32, #tpu.memory_space<vmem>>, vector<1x128x256xf32>
    %82 = vector.shape_cast %81 : vector<1x128x256xf32> to vector<128x256xf32>
    %cst_30 = arith.constant dense<0.000000e+00> : vector<1x256xf32>
    %83 = tpu.matmul %80, %82, %cst_30 {dimension_numbers = #tpu.dot_dimension_numbers<[1], [0], [0], [1], [0, 0, 1, 1], [], []>} : vector<1x128xf32>, vector<128x256xf32>, vector<1x256xf32> -> vector<1x256xf32>
    %84 = arith.addf %77, %83 : vector<1x256xf32>
    %85 = vector.extract_strided_slice %43 {offsets = [12, 0], sizes = [1, 128], strides = [1, 1]} : vector<16x128xf32> to vector<1x128xf32>
    %86 = vector.extract_strided_slice %43 {offsets = [13, 0], sizes = [1, 128], strides = [1, 1]} : vector<16x128xf32> to vector<1x128xf32>
    %87 = arith.maximumf %85, %86 : vector<1x128xf32>
    %c6 = arith.constant 6 : index
    %c0_31 = arith.constant 0 : index
    %c0_32 = arith.constant 0 : index
    %88 = vector.load %arg4[%c6, %c0_31, %c0_32] : memref<8x128x256xf32, #tpu.memory_space<vmem>>, vector<1x128x256xf32>
    %89 = vector.shape_cast %88 : vector<1x128x256xf32> to vector<128x256xf32>
    %cst_33 = arith.constant dense<0.000000e+00> : vector<1x256xf32>
    %90 = tpu.matmul %87, %89, %cst_33 {dimension_numbers = #tpu.dot_dimension_numbers<[1], [0], [0], [1], [0, 0, 1, 1], [], []>} : vector<1x128xf32>, vector<128x256xf32>, vector<1x256xf32> -> vector<1x256xf32>
    %91 = arith.addf %84, %90 : vector<1x256xf32>
    %92 = vector.extract_strided_slice %43 {offsets = [14, 0], sizes = [1, 128], strides = [1, 1]} : vector<16x128xf32> to vector<1x128xf32>
    %93 = vector.extract_strided_slice %43 {offsets = [15, 0], sizes = [1, 128], strides = [1, 1]} : vector<16x128xf32> to vector<1x128xf32>
    %94 = arith.maximumf %92, %93 : vector<1x128xf32>
    %c7 = arith.constant 7 : index
    %c0_34 = arith.constant 0 : index
    %c0_35 = arith.constant 0 : index
    %95 = vector.load %arg4[%c7, %c0_34, %c0_35] : memref<8x128x256xf32, #tpu.memory_space<vmem>>, vector<1x128x256xf32>
    %96 = vector.shape_cast %95 : vector<1x128x256xf32> to vector<128x256xf32>
    %cst_36 = arith.constant dense<0.000000e+00> : vector<1x256xf32>
    %97 = tpu.matmul %94, %96, %cst_36 {dimension_numbers = #tpu.dot_dimension_numbers<[1], [0], [0], [1], [0, 0, 1, 1], [], []>} : vector<1x128xf32>, vector<128x256xf32>, vector<1x256xf32> -> vector<1x256xf32>
    %98 = arith.addf %91, %97 : vector<1x256xf32>
    %99 = arith.addf %98, %5 : vector<1x256xf32>
    %cst_37 = arith.constant 0.000000e+00 : f32
    %100 = vector.broadcast %cst_37 : f32 to vector<1x256xf32>
    %101 = arith.maximumf %99, %100 : vector<1x256xf32>
    %c0_38 = arith.constant 0 : index
    %c0_39 = arith.constant 0 : index
    %102 = vector.load %arg5[%c0_38, %c0_39] : memref<256x8xf32, #tpu.memory_space<vmem>>, vector<256x8xf32>
    %cst_40 = arith.constant dense<0.000000e+00> : vector<1x8xf32>
    %103 = tpu.matmul %101, %102, %cst_40 {dimension_numbers = #tpu.dot_dimension_numbers<[1], [0], [0], [1], [0, 0, 1, 1], [], []>} : vector<1x256xf32>, vector<256x8xf32>, vector<1x8xf32> -> vector<1x8xf32>
    %104 = vector.broadcast %6 : vector<1x1xf32> to vector<1x8xf32>
    %105 = arith.addf %103, %104 : vector<1x8xf32>
    %106 = vector.shape_cast %105 : vector<1x8xf32> to vector<1x1x8xf32>
    %c0_41 = arith.constant 0 : index
    %c0_42 = arith.constant 0 : index
    %c0_43 = arith.constant 0 : index
    %107 = vector.load %arg7[%c0_41, %c0_42, %c0_43] : memref<1x1x8xf32, #tpu.memory_space<vmem>>, vector<1x1x8xf32>
    tpu.vector_store %arg7[%c0_41, %c0_42, %c0_43], %106 {strides = array<i32>} : memref<1x1x8xf32, #tpu.memory_space<vmem>>, vector<1x1x8xf32>,
    return
  }
  func.func @transform_0(%arg0: i32) -> (i32, i32) {
    %c0_i32 = arith.constant 0 : i32
    %c0_i32_0 = arith.constant 0 : i32
    return %arg0, %c0_i32 : i32, i32
  }
  func.func @transform_1(%arg0: i32) -> (i32, i32) {
    %c0_i32 = arith.constant 0 : i32
    %c0_i32_0 = arith.constant 0 : i32
    %c0_i32_1 = arith.constant 0 : i32
    return %c0_i32, %c0_i32_0 : i32, i32
  }
  func.func @transform_2(%arg0: i32) -> (i32, i32) {
    %c0_i32 = arith.constant 0 : i32
    %c0_i32_0 = arith.constant 0 : i32
    %c0_i32_1 = arith.constant 0 : i32
    return %c0_i32, %c0_i32_0 : i32, i32
  }
  func.func @transform_3(%arg0: i32) -> (i32, i32, i32) {
    %c0_i32 = arith.constant 0 : i32
    %c0_i32_0 = arith.constant 0 : i32
    %c0_i32_1 = arith.constant 0 : i32
    %c0_i32_2 = arith.constant 0 : i32
    return %c0_i32, %c0_i32_0, %c0_i32_1 : i32, i32, i32
  }
  func.func @transform_4(%arg0: i32) -> (i32, i32) {
    %c0_i32 = arith.constant 0 : i32
    %c0_i32_0 = arith.constant 0 : i32
    %c0_i32_1 = arith.constant 0 : i32
    return %c0_i32, %c0_i32_0 : i32, i32
  }
  func.func @transform_5(%arg0: i32) -> (i32, i32) {
    %c0_i32 = arith.constant 0 : i32
    %c0_i32_0 = arith.constant 0 : i32
    %c0_i32_1 = arith.constant 0 : i32
    return %c0_i32, %c0_i32_0 : i32, i32
  }
  func.func @transform_6(%arg0: i32) -> (i32, i32, i32) {
    %c0_i32 = arith.constant 0 : i32
    %c0_i32_0 = arith.constant 0 : i32
    %c0_i32_1 = arith.constant 0 : i32
    return %arg0, %c0_i32, %c0_i32_0 : i32, i32, i32
  }
}

</mosaic_0001>

<bundles_post_ra>
// kernel: tpu_custom_call.1
= control target key start
LH: loop header
LB: loop body
LE: loop exit
PB: predicated region body
PF: predicated region fallthrough
CT: control target
= control target key end

     0   :  { %11 = vsyncpa [#allocation3], 0  ;;  %s2886_s0 = inlined_call_operand.vmem [shape: f32[32,96], index: 0, kind: input, shape index: {}]   ;;  %s2887_s1 = inlined_call_operand.vmem [shape: f32[96,128], index: 1, kind: input, shape index: {}]   ;;  %s2888_s2 = inlined_call_operand.hbm [shape: f32[384,128], index: 2, kind: input, shape index: {}]   ;;  %s2889_s3 = inlined_call_operand.hbm [shape: f32[8,128,256], index: 3, kind: input, shape index: {}]   ;;  %s2890_s4 = inlined_call_operand.vmem [shape: f32[256,8], index: 4, kind: input, shape index: {}]   ;;  %s2891_s5 = inlined_call_operand.vmem [shape: f32[8,256], index: 5, kind: input, shape index: {}]   ;;  %s2892_s6 = inlined_call_operand.hbm [shape: f32[2,1,8], index: 6, kind: output, shape index: {}]  }
   0x1   :  { %12 = vsyncpa [#allocation6], 0 }
   0x2   :  { %13 = vsyncpa [#allocation4], 0 }
   0x3   :  { %15 = vsyncpa [#allocation4 + $0x1], 0  ;;  %s2530_s21 = smov 0   ;;  %s2532_s22 = smov 0  }
   0x4   :  { %s2534_s23 = smov 0   ;;  %s2536_s24 = smov 0  }
   0x5 LB: > { %s2551_s25 = sadd.s32 4294967295, %s2484_s24   ;;  %s1712_s26 = sadd.s32 4294967294, %s2484_s24   ;;  %s2484_s24 = sphi %s2536_s24, %s2910_s24   ;;  %s2480_s23 = sphi %s2534_s23, %s2909_s23   ;;  %s2476_s22 = sphi %s2532_s22, %s2908_s22   ;;  %s2472_s21 = sphi %s2530_s21, %s2907_s21  }
   0x6   : > { %s2555_s27 = sadd.s32 1, %s2484_s24   ;;  %s159_s28 = sadd.s32 1, %s2480_s23 }
   0x7   : > { %s156_s29 = ssub.s32 %s2484_s24, %s2555_s27  ;;  %p169_p0 = scmp.ne.s32.totalorder %s2480_s23, %s2476_s22 }
   0x8   : > { %p157_p1 = scmp.eq.s32.totalorder %s156_s29, 0  ;;  %p170_p2 = scmp.eq.s32.totalorder %s2551_s25, 1 }
   0x9   : > { %p175_p3 = scmp.ne.s32.totalorder %s2476_s22, %s2472_s21  ;;  %p176_p4 = scmp.eq.s32.totalorder %s1712_s26, 1 }
   0xa   : > { %s2566_s30 = scalar_select %p157_p1, %s2480_s23, %s159_s28  }
   0xb   : > { %p2568_p5 = por %p170_p2, %p169_p0  ;;  %p2572_p6 = por %p176_p4, %p175_p3 }
   0xc   : > { %p1713_p7 = scmp.ge.s32.totalorder %s2484_s24, 1  ;;  %p183_p8 = scmp.lt.s32.totalorder %s2484_s24, 3 }
   0xd   : > { %s2896_s7 = scalar_select %p2568_p5, 1, 0 }
   0xe   : > { %s2897_s8 = scalar_select %p2572_p6, 1, 0 }
   0xf   : > { %p2893_p9 = scmp.eq.s32.totalorder %s2551_s25, 0  ;;  %p2579_p10 = pnand %p1713_p7, %p183_p8 }
  0x10   : > { %s2486_s10 = smov [#allocation2]   ;;  %s2487_s13 = smov [#allocation5]  }
  0x11   : > { %s2898_s9 = scalar_select %p2579_p10, 1, 0 }
  0x12   : > { %s198_s11 = sshll.u32 %s2486_s10, 4  ;;  %p2300_p11 = pneg %p2579_p10  ;;  %s199_s11 = int_to_ptr.vmem [resolvable:$true] %s198_s11 }
  0x13   : > { %s211_s14 = sshll.u32 %s2487_s13, 4  ;;  %s2358_s17 = scalar_lea.hbm %s2888_s2, 6144  ;;  %s2591_s14 = int_to_ptr.vmem [resolvable:$true] %s211_s14 }
  0x14   : > { %p2587_p12 = pnand %p2893_p9, %p2300_p11  ;;  %p2359_p13 = scmp.ne.s32.totalorder %s2888_s2, %s2358_s17 }
  0x15   : > { %p2365_p3 = scmp.lt.u32.totalorder %s2358_s17, %s2888_s2 }
  0x16   : > { %p2360_p0 = pneg %p2587_p12 }
  0x18   : > { %p2361_p1 = pnand %p2360_p0, %p2359_p13 }
  0x1a   : > { %p2362_p2 = pneg %p2361_p1 }
  0x1c   : > { %p2367_p4 = pnand %p2365_p3, %p2362_p2 }
  0x1e   : > { %2370 = shalt.err (!%p2367_p4)
}
  0x1f   : > { %s2371_s28 = scalar_lea.vmem %s199_s11, 6144  ;;  %p2379_p9 = scmp.lt.s32.totalorder %s199_s11, %s199_s11 }
  0x20   : > { %p2372_p7 = scmp.ne.s32.totalorder %s199_s11, %s2371_s28  ;;  %p2380_p6 = scmp.lt.s32.totalorder %s2371_s28, %s2371_s28 }
  0x22   : > { %p2374_p8 = pnand %p2372_p7, %p2360_p0  ;;  %p2381_p5 = por %p2380_p6, %p2379_p9 }
  0x24   : > { %p2375_p11 = pneg %p2374_p8 }
  0x26   : > { %p2382_p10 = pnand %p2381_p5, %p2375_p11 }
  0x28   : > { %2385 = shalt.err (!%p2382_p10)
}
  0x29   : > { %s2488_s29 = smov 128   ;;  %s2489_s10 = smov 8  }
  0x2a   : > { %2303 = dma.hbm_to_vmem [thread:$0]  (!%p2587_p12), %s2888_s2, 6144, %s199_s11, [#allocation3], %s2488_s29, %s2488_s29, %s2489_s10  }
  0x2b   : > { %s2386_s18 = scalar_lea.hbm %s2889_s3, 32768 }
  0x2c   : > { %p2387_p13 = scmp.ne.s32.totalorder %s2889_s3, %s2386_s18  ;;  %p2393_p9 = scmp.lt.u32.totalorder %s2386_s18, %s2889_s3 }
  0x2e   : > { %p2389_p5 = pnand %p2387_p13, %p2360_p0 }
  0x30   : > { %p2390_p6 = pneg %p2389_p5 }
  0x32   : > { %p2395_p10 = pnand %p2393_p9, %p2390_p6 }
  0x34   : > { %2398 = shalt.err (!%p2395_p10)
}
  0x35   : > { %s2399_s11 = scalar_lea.vmem %s2591_s14, 32768  ;;  %p2407_p4 = scmp.lt.s32.totalorder %s2591_s14, %s2591_s14 }
  0x36   : > { %p2400_p1 = scmp.ne.s32.totalorder %s2591_s14, %s2399_s11  ;;  %p2408_p7 = scmp.lt.s32.totalorder %s2399_s11, %s2399_s11 }
  0x38   : > { %p2402_p2 = pnand %p2400_p1, %p2360_p0  ;;  %p2409_p8 = por %p2408_p7, %p2407_p4 }
  0x3a   : > { %p2403_p3 = pneg %p2402_p2 }
  0x3c   : > { %p2410_p11 = pnand %p2409_p8, %p2403_p3 }
  0x3e   : > { %2413 = shalt.err (!%p2410_p11)
}
  0x3f   : > { %s2490_s29 = smov 256   ;;  %s2491_s10 = smov 16  }
  0x40   : > { %2306 = dma.hbm_to_vmem [thread:$0]  (!%p2587_p12), %s2889_s3, 32768, %s2591_s14, [#allocation6], %s2490_s29, %s2490_s29, %s2491_s10  }
  0x41   : > { %p2900_p13 = scmp.ne.s32.totalorder %s2898_s9, 0 }
  0x42   : > { %p2901_p0 = scmp.eq.s32.totalorder (!%p2900_p13), %s2551_s25, 0 }
  0x43   : > { %242 = sbr.rel (%p2900_p13) target bundleno = 1195 (0x4ab), region = 44 }
  0x4a   : > { %2459 = dma.done.wait (%p2901_p0), [#allocation3], 6144   ;;  %p2902_p5 = pmov %p2901_p0 }
  0x4b   : > { %p2903_p6 = pmov %p2901_p0 }
  0x4c   : > { %2461 = vsyncadd (%p2902_p5), [#allocation3], 4294961152 }
  0x4d   : > { %2463 = dma.done.wait (%p2903_p6), [#allocation6], 32768   ;;  %p2904_p9 = pmov %p2901_p0 }
  0x4e   : > { %s1720_s12 = sshll.u32 %s2551_s25, 1  ;;  %v285_v0 = vld [vmem:[%s2887_s1] sm:$0xff]  ;;  %v286_v1 = vld [vmem:[%s2887_s1 + $0x8] sm:$0xff]  ;;  %v287_v2 = vld [vmem:[%s2887_s1 + $0x10] sm:$0xff]  ;;  %vm301_vm0 = vcmask 785408   ;;  %vm394_vm1 = vcmask 1040384  }
  0x4f   : > { %2465 = vsyncadd (%p2904_p9), [#allocation6], 4294934528  ;;  %p276_p10 = scmp.lt.s32.totalorder %s1720_s12, 3  ;;  %v1900_v3 = vpack.c.bf16 %v286_v1, %v285_v0  ;;  %v288_v4 = vld [vmem:[%s2887_s1 + $0x18] sm:$0xff]  ;;  %v289_v6 = vld [vmem:[%s2887_s1 + $0x20] sm:$0xff]  ;;  %vm408_vm2 = vcmask 1046528  }
  0x50   : > { %v1904_v5 = vpack.c.bf16 %v288_v4, %v287_v2  ;;  %v290_v7 = vld [vmem:[%s2887_s1 + $0x28] sm:$0xff]  ;;  %v291_v10 = vld [vmem:[%s2887_s1 + $0x30] sm:$0xff]  ;;  %v292_v11 = vld [vmem:[%s2887_s1 + $0x38] sm:$0xff]  ;;  %s273_s28 = sand.u32 1, %s2476_s22   ;;  %s1728_s11 = sshll.u32 %s2551_s25, 4  ;;  %vm1620_vm5 = vcmask 57344  }
  0x51   : > { %s2912_s12 = smov (!%p276_p10, %s1720_s12), 3  ;;  %1901 = vmatprep.subr.bf16.mxu0 %v1900_v3  ;;  %v1908_v9 = vpack.c.bf16 %v290_v7, %v289_v6  ;;  %v1912_v12 = vpack.c.bf16 %v292_v11, %v291_v10  ;;  %v293_v13 = vld [vmem:[%s2887_s1 + $0x40] sm:$0xff]  ;;  %v294_v14 = vld [vmem:[%s2887_s1 + $0x48] sm:$0xff]  ;;  %v295_v16 = vld [vmem:[%s2887_s1 + $0x50] sm:$0xff]  ;;  %v297_v7 = vlaneseq  ;;  %s274_s29 = scalar_lea.vmem [#allocation7], %s273_s28 }
  0x52   : > { %s1721_s14 = sshll.u32 %s2912_s12, 3  ;;  %1903 = vmatpush3.bf16.msra.mxu0 %v1900_v3  ;;  %v1916_v15 = vpack.c.bf16 %v294_v14, %v293_v13  ;;  %v296_v17 = vld [vmem:[%s2887_s1 + $0x58] sm:$0xff]  ;;  %v438_v19 = vld [vmem:[#allocation2 + $0x80] sm:$0xff]  ;;  %v439_v20 = vld [vmem:[#allocation2 + $0x88] sm:$0xff]  ;;  %s1635_s13 = sshll.u32 %s274_s29, 4  ;;  %s2846_s13 = int_to_ptr.vmem [resolvable:$true] %s1635_s13 }
  0x53   : > { %s2666_s10 = scalar_lea.vmem %s2886_s0, %s1721_s14  ;;  %1905 = vmatprep.subr.bf16.mxu0 %v1904_v5  ;;  %v1920_v18 = vpack.c.bf16 %v296_v17, %v295_v16  ;;  %v1924_v21 = vpack.c.bf16 %v439_v20, %v438_v19  ;;  %v422_v22 = vld [vmem:[#allocation2] sm:$0xff]  ;;  %v423_v23 = vld [vmem:[#allocation2 + $0x8] sm:$0xff]  ;;  %v440_v24 = vld [vmem:[#allocation2 + $0x90] sm:$0xff]  ;;  %s2844_s12 = scalar_lea.hbm %s2892_s6, %s1728_s11 }
  0x54   : > { %v283_v8 = vld [vmem:[%s2666_s10] sm:$0xff]  ;;  %v441_v25 = vld [vmem:[#allocation2 + $0x98] sm:$0xff]  ;;  %v284_v26 = vld [vmem:[%s2666_s10 + $0x8] sm:$0xff]  ;;  %v1926_v27 = vpack.c.bf16 %v423_v23, %v422_v22  ;;  %s1623_s16 = scalar_lea.sflag [#allocation4], %s273_s28  ;;  %s2414_s14 = scalar_lea.vmem %s2846_s13, 16 }
  0x55   : > { %1862 = vmatprep.mubr.msk.f32.mxu0 %vm301_vm0, %v283_v8  ;;  %v1928_v28 = vpack.c.bf16 %v441_v25, %v440_v24  ;;  %v424_v29 = vld [vmem:[#allocation2 + $0x10] sm:$0xff]  ;;  %v425_v30 = vld [vmem:[#allocation2 + $0x18] sm:$0xff]  ;;  %v442_v31 = vld [vmem:[#allocation2 + $0xa0] sm:$0xff]  ;;  %v2696_v8 = vshrl.u32 %v297_v7, 7  ;;  %p2415_p12 = scmp.ne.s32.totalorder %s2846_s13, %s2414_s14  ;;  %p2905_p1 = scmp.ne.s32.totalorder %s2896_s7, 0 }
  0x56   : > { %1907 = vmatpush3.bf16.msra.mxu0 %v1904_v5  ;;  %v443_v32 = vld [vmem:[#allocation2 + $0xa8] sm:$0xff]  ;;  %v1930_v33 = vpack.c.bf16 %v425_v30, %v424_v29  ;;  %v426_v35 = vld [vmem:[#allocation2 + $0x20] sm:$0xff]  ;;  %v444_v37 = vld [vmem:[#allocation2 + $0xb0] sm:$0xff]  ;;  %s2494_s25 = smov [#allocation7]  }
  0x57   : > { %1909 = vmatprep.subr.bf16.mxu0 %v1908_v9  ;;  %v1932_v34 = vpack.c.bf16 %v443_v32, %v442_v31  ;;  %v427_v36 = vld [vmem:[#allocation2 + $0x28] sm:$0xff]  ;;  %v445_v38 = vld [vmem:[#allocation2 + $0xb8] sm:$0xff]  ;;  %v428_v41 = vld [vmem:[#allocation2 + $0x30] sm:$0xff]  ;;  %vm1731_vm3 = vcmp.ge.s32.totalorder %v2696_v8, 1  ;;  %p2416_p2 = pnand %p2415_p12, %p2905_p1  ;;  %s2418_s9 = sshll.u32 %s2494_s25, 4  ;;  %s2419_s9 = int_to_ptr.vmem [resolvable:$false] %s2418_s9 }
  0x58   : > { %v1934_v39 = vpack.c.bf16 %v427_v36, %v426_v35  ;;  %v1936_v40 = vpack.c.bf16 %v445_v38, %v444_v37  ;;  %v429_v42 = vld [vmem:[#allocation2 + $0x38] sm:$0xff]  ;;  %v446_v43 = vld [vmem:[#allocation2 + $0xc0] sm:$0xff]  ;;  %v447_v44 = vld [vmem:[#allocation2 + $0xc8] sm:$0xff]  ;;  %s2420_s17 = scalar_lea.vmem %s2419_s9, 32  ;;  %p2421_p4 = scmp.lt.s32.totalorder %s2846_s13, %s2419_s9 }
  0x59   : > { %v1938_v45 = vpack.c.bf16 %v429_v42, %v428_v41  ;;  %v1940_v46 = vpack.c.bf16 %v447_v44, %v446_v43  ;;  %v430_v47 = vld [vmem:[#allocation2 + $0x40] sm:$0xff]  ;;  %v431_v48 = vld [vmem:[#allocation2 + $0x48] sm:$0xff]  ;;  %v448_v49 = vld [vmem:[#allocation2 + $0xd0] sm:$0xff]  ;;  %p2417_p3 = pneg %p2416_p2  ;;  %p2422_p7 = scmp.lt.s32.totalorder %s2420_s17, %s2414_s14 }
  0x5a   : > { %1911 = vmatpush3.bf16.msra.mxu0 %v1908_v9  ;;  %v449_v50 = vld [vmem:[#allocation2 + $0xd8] sm:$0xff]  ;;  %v1942_v51 = vpack.c.bf16 %v431_v48, %v430_v47  ;;  %v432_v53 = vld [vmem:[#allocation2 + $0x50] sm:$0xff]  ;;  %v450_v56 = vld [vmem:[#allocation2 + $0xe0] sm:$0xff]  ;;  %v299_v9 = vsub.s32 0, %v2696_v8  ;;  %v387_v47 = vadd.s32 8, %v2696_v8 }
  0x5b   : > { %1913 = vmatprep.subr.bf16.mxu0 %v1912_v12  ;;  %v1944_v52 = vpack.c.bf16 %v449_v50, %v448_v49  ;;  %v433_v54 = vld [vmem:[#allocation2 + $0x58] sm:$0xff]  ;;  %v451_v57 = vld [vmem:[#allocation2 + $0xe8] sm:$0xff]  ;;  %v434_v59 = vld [vmem:[#allocation2 + $0x60] sm:$0xff]  ;;  %p2423_p8 = por %p2422_p7, %p2421_p4 }
  0x5c   : > { %v1946_v55 = vpack.c.bf16 %v433_v54, %v432_v53  ;;  %v1948_v58 = vpack.c.bf16 %v451_v57, %v450_v56  ;;  %v435_v60 = vld [vmem:[#allocation2 + $0x68] sm:$0xff]  ;;  %v452_v62 = vld [vmem:[#allocation2 + $0xf0] sm:$0xff]  ;;  %v453_v63 = vld [vmem:[#allocation2 + $0xf8] sm:$0xff]  ;;  %vm1732_vm4 = vcmp.lt.s32.totalorder %v387_v47, 15 }
  0x5d   : > { %v1950_v61 = vpack.c.bf16 %v435_v60, %v434_v59  ;;  %v1952_v0 = vpack.c.bf16 %v453_v63, %v452_v62  ;;  %v436_v1 = vld [vmem:[#allocation2 + $0x70] sm:$0xff]  ;;  %v437_v2 = vld [vmem:[#allocation2 + $0x78] sm:$0xff]  ;;  %v454_v4 = vld [vmem:[#allocation2 + $0x100] sm:$0xff]  ;;  %p2424_p11 = pnand %p2423_p8, %p2417_p3 }
  0x5e   : > { %1915 = vmatpush3.bf16.msra.mxu0 %v1912_v12  ;;  %v1954_v3 = vpack.c.bf16 %v437_v2, %v436_v1  ;;  %v455_v5 = vld [vmem:[#allocation2 + $0x108] sm:$0xff]  ;;  %v2702_v10 = vld [vmem:[%s2891_s5] sm:$0xff]  ;;  %v457_v19 = vld [vmem:[#allocation2 + $0x118] sm:$0xff] }
  0x5f   : > { %1917 = vmatprep.subr.bf16.mxu0 %v1916_v15  ;;  %v1956_v6 = vpack.c.bf16 %v455_v5, %v454_v4  ;;  %v300_v11 = vrot.slane %v2702_v10, %v299_v9  ;;  %v458_v29 = vld [vmem:[#allocation2 + $0x120] sm:$0xff]  ;;  %v459_v30 = vld [vmem:[#allocation2 + $0x128] sm:$0xff]  ;;  %v460_v32 = vld [vmem:[#allocation2 + $0x130] sm:$0xff] }
  0x60   : > { %v1964_v31 = vpack.c.bf16 %v459_v30, %v458_v29  ;;  %v462_v35 = vld [vmem:[#allocation2 + $0x140] sm:$0xff]  ;;  %v463_v36 = vld [vmem:[#allocation2 + $0x148] sm:$0xff]  ;;  %v464_v38 = vld [vmem:[#allocation2 + $0x150] sm:$0xff] }
  0x61   : > { %v1972_v37 = vpack.c.bf16 %v463_v36, %v462_v35  ;;  %v466_v41 = vld [vmem:[#allocation2 + $0x160] sm:$0xff]  ;;  %v467_v42 = vld [vmem:[#allocation2 + $0x168] sm:$0xff]  ;;  %v468_v44 = vld [vmem:[#allocation2 + $0x170] sm:$0xff] }
  0x62   : > { %1919 = vmatpush3.bf16.msra.mxu0 %v1916_v15  ;;  %v1980_v43 = vpack.c.bf16 %v467_v42, %v466_v41  ;;  %v676_v48 = vld [vmem:[#allocation5 + $0x108] sm:$0xff]  ;;  %v678_v49 = vld [vmem:[#allocation5 + $0x118] sm:$0xff]  ;;  %v675_v53 = vld [vmem:[#allocation5 + $0x100] sm:$0xff] }
  0x63   : > { %1921 = vmatprep.subr.bf16.mxu0 %v1920_v18  ;;  %v854_v50 = vld [vmem:[#allocation5 + $0x208] sm:$0xff]  ;;  %v677_v54 = vld [vmem:[#allocation5 + $0x110] sm:$0xff]  ;;  %v853_v57 = vld [vmem:[#allocation5 + $0x200] sm:$0xff] }
  0x64   : > { %v1990_v56 = vpack.c.bf16 %v677_v54, %v675_v53  ;;  %v680_v59 = vld [vmem:[#allocation5 + $0x128] sm:$0xff]  ;;  %v860_v63 = vld [vmem:[#allocation5 + $0x238] sm:$0xff]  ;;  %v679_v2 = vld [vmem:[#allocation5 + $0x120] sm:$0xff] }
  0x65   : > { %v858_v62 = vld [vmem:[#allocation5 + $0x228] sm:$0xff]  ;;  %v857_v4 = vld [vmem:[#allocation5 + $0x220] sm:$0xff]  ;;  %v686_v9 = vld [vmem:[#allocation5 + $0x158] sm:$0xff] }
  0x66   : > { %1923 = vmatpush3.bf16.msra.mxu0 %v1920_v18  ;;  %v456_v18 = vld [vmem:[#allocation2 + $0x110] sm:$0xff]  ;;  %v2056_v1 = vpack.c.bf16 %v860_v63, %v858_v62  ;;  %v684_v7 = vld [vmem:[#allocation5 + $0x148] sm:$0xff]  ;;  %v865_v30 = vld [vmem:[#allocation5 + $0x260] sm:$0xff] }
  0x67   : > { %1925 = vmatprep.subr.bf16.mxu0 %v1924_v21  ;;  %v1960_v24 = vpack.c.bf16 %v457_v19, %v456_v18  ;;  %v861_v18 = vld [vmem:[#allocation5 + $0x240] sm:$0xff]  ;;  %v863_v19 = vld [vmem:[#allocation5 + $0x250] sm:$0xff]  ;;  %v872_v35 = vld [vmem:[#allocation5 + $0x298] sm:$0xff] }
  0x68   : > { %v693_v41 = vld [vmem:[#allocation5 + $0x190] sm:$0xff]  ;;  %v869_v42 = vld [vmem:[#allocation5 + $0x280] sm:$0xff]  ;;  %v698_v47 = vld [vmem:[#allocation5 + $0x1b8] sm:$0xff] }
  0x69   : > { %1863 = vmatmul.mubr.msk.f32.vlgmr.msra.gmra.mrb[0].mxu0 %vm301_vm0, %v284_v26  ;;  %v880_v62 = vld [vmem:[#allocation5 + $0x2d8] sm:$0xff]  ;;  %v699_v63 = vld [vmem:[#allocation5 + $0x1c0] sm:$0xff] }
  0x6a   : > { %1927 = vmatpush3.bf16.msra.mxu0 %v1926_v27 }
  0x6b   : > { %1929 = vmatprep.subr.bf16.mxu0 %v1928_v28 }
  0x6e   : > { %1931 = vmatpush3.bf16.msra.mxu0 %v1930_v33  ;;  %v461_v33 = vld [vmem:[#allocation2 + $0x138] sm:$0xff] }
  0x6f   : > { %1933 = vmatprep.subr.bf16.mxu0 %v1932_v34  ;;  %v1968_v34 = vpack.c.bf16 %v461_v33, %v460_v32  ;;  %v692_v32 = vld [vmem:[#allocation5 + $0x188] sm:$0xff]  ;;  %v694_v33 = vld [vmem:[#allocation5 + $0x198] sm:$0xff] }
  0x72   : > { %1935 = vmatpush3.bf16.msra.mxu0 %v1934_v39  ;;  %v465_v39 = vld [vmem:[#allocation2 + $0x158] sm:$0xff] }
  0x73   : > { %1937 = vmatprep.subr.bf16.mxu0 %v1936_v40  ;;  %v1976_v40 = vpack.c.bf16 %v465_v39, %v464_v38  ;;  %v2004_v38 = vpack.c.bf16 %v694_v33, %v692_v32 }
  0x76   : > { %1939 = vmatpush3.bf16.msra.mxu0 %v1938_v45  ;;  %v469_v45 = vld [vmem:[#allocation2 + $0x178] sm:$0xff] }
  0x77   : > { %1941 = vmatprep.subr.bf16.mxu0 %v1940_v46  ;;  %v1984_v46 = vpack.c.bf16 %v469_v45, %v468_v44  ;;  %v871_v44 = vld [vmem:[#allocation5 + $0x290] sm:$0xff] }
  0x78   : > { %v2070_v45 = vpack.c.bf16 %v871_v44, %v869_v42 }
  0x7a   : > { %1943 = vmatpush3.bf16.msra.mxu0 %v1942_v51  ;;  %v1988_v51 = vpack.c.bf16 %v678_v49, %v676_v48  ;;  %v874_v48 = vld [vmem:[#allocation5 + $0x2a8] sm:$0xff] }
  0x7b   : > { %1945 = vmatprep.subr.bf16.mxu0 %v1944_v52  ;;  %v856_v52 = vld [vmem:[#allocation5 + $0x218] sm:$0xff] }
  0x7e   : > { %1947 = vmatpush3.bf16.msra.mxu0 %v1946_v55  ;;  %v2052_v55 = vpack.c.bf16 %v856_v52, %v854_v50  ;;  %v876_v50 = vld [vmem:[#allocation5 + $0x2b8] sm:$0xff]  ;;  %v697_v52 = vld [vmem:[#allocation5 + $0x1b0] sm:$0xff] }
  0x7f   : > { %1949 = vmatprep.subr.bf16.mxu0 %v1948_v58  ;;  %v855_v58 = vld [vmem:[#allocation5 + $0x210] sm:$0xff]  ;;  %v2072_v53 = vpack.c.bf16 %v876_v50, %v874_v48 }
  0x80   : > { %v2054_v60 = vpack.c.bf16 %v855_v58, %v853_v57  ;;  %2053 = vmatprep.subr.bf16.mxu1 %v2052_v55  ;;  %v873_v55 = vld [vmem:[#allocation5 + $0x2a0] sm:$0xff]  ;;  %v700_v58 = vld [vmem:[#allocation5 + $0x1c8] sm:$0xff] }
  0x82   : > { %1951 = vmatpush3.bf16.msra.mxu0 %v1950_v61  ;;  %v682_v61 = vld [vmem:[#allocation5 + $0x138] sm:$0xff]  ;;  %2055 = vmatpush1.bf16.msra.mxu1 %v2054_v60  ;;  %v878_v60 = vld [vmem:[#allocation5 + $0x2c8] sm:$0xff] }
  0x83   : > { %1953 = vmatprep.subr.bf16.mxu0 %v1952_v0  ;;  %v1992_v0 = vpack.c.bf16 %v682_v61, %v680_v59  ;;  %2057 = vmatprep.subr.bf16.mxu1 %v2056_v1  ;;  %v702_v59 = vld [vmem:[#allocation5 + $0x1d8] sm:$0xff]  ;;  %v2076_v1 = vpack.c.bf16 %v880_v62, %v878_v60  ;;  %v648_v62 = vld [vmem:[#allocation5 + $0x30] sm:$0xff] }
  0x84   : > { %v2012_v61 = vpack.c.bf16 %v702_v59, %v700_v58  ;;  %v968_v58 = vld [vmem:[#allocation5 + $0x338] sm:$0xff] }
  0x86   : > { %1955 = vmatpush3.bf16.msra.mxu0 %v1954_v3  ;;  %v681_v3 = vld [vmem:[#allocation5 + $0x130] sm:$0xff] }
  0x87   : > { %1957 = vmatprep.subr.bf16.mxu0 %v1956_v6  ;;  %v1994_v5 = vpack.c.bf16 %v681_v3, %v679_v2  ;;  %v877_v3 = vld [vmem:[#allocation5 + $0x2c0] sm:$0xff] }
 0x13c   : > { %v1864_v12 = vpop.f32.mrb[0].mxu0 }
 0x13d   : > { %v380_v13 = vadd.f32 %v1864_v12, %v300_v11  ;;  %v374_v14 = vpop.f32.mrb[1].mxu0  ;;  %v1996_v12 = vpack.c.bf16 %v686_v9, %v684_v7  ;;  %v706_v7 = vld [vmem:[#allocation5 + $0x1f8] sm:$0xff]  ;;  %v882_v9 = vld [vmem:[#allocation5 + $0x2e8] sm:$0xff] }
 0x13e   : > { %v375_v15 = vadd.f32 %v374_v14, %v300_v11  ;;  %v864_v14 = vld [vmem:[#allocation5 + $0x258] sm:$0xff] }
 0x13f   : > { %v384_v16 = vmax.f32 %v380_v13, 0.0  ;;  %v862_v13 = vld [vmem:[#allocation5 + $0x248] sm:$0xff] }
 0x140   : > { %v383_v17 = vmax.f32 %v375_v15, 0.0  ;;  %v683_v15 = vld [vmem:[#allocation5 + $0x140] sm:$0xff] }
 0x141   : > { %v391_v20 = vrot.slane %v384_v16, 7  ;;  %v410_v21 = vrot.slane %v384_v16, 1 }
 0x142   : > { %v395_v22 = vrot.slane %v383_v17, 7  ;;  %v409_v23 = vrot.slane %v383_v17, 1  ;;  %538 = vmatprep.mubr.f32.mxu0 %v383_v17  ;;  %v685_v17 = vld [vmem:[#allocation5 + $0x150] sm:$0xff] }
 0x144   : > { %v399_v25 = vsel %vm394_vm1, %v391_v20, %v395_v22  ;;  %v396_v26 = vsel %vm394_vm1, %v395_v22, %v391_v20  ;;  %v411_v27 = vsel %vm408_vm2, %v409_v23, %v410_v21  ;;  %v415_v28 = vsel %vm408_vm2, %v410_v21, %v409_v23  ;;  %v688_v21 = vld [vmem:[#allocation5 + $0x168] sm:$0xff]  ;;  %v690_v22 = vld [vmem:[#allocation5 + $0x178] sm:$0xff] }
 0x145   : > { %1725 = vmatmul.mubr.msk.f32.vlgmr.msra.gmra.mrb[2].mxu0 %vm1731_vm3, %v399_v25  ;;  %v1998_v20 = vpack.c.bf16 %v685_v17, %v683_v15  ;;  %v866_v23 = vld [vmem:[#allocation5 + $0x268] sm:$0xff]  ;;  %v2000_v25 = vpack.c.bf16 %v690_v22, %v688_v21  ;;  %v881_v17 = vld [vmem:[#allocation5 + $0x2e0] sm:$0xff]  ;;  %v645_v21 = vld [vmem:[#allocation5 + $0x18] sm:$0xff] }
 0x146   : > { %1959 = vmatpush3.bf16.msra.mxu0 %v1956_v6  ;;  %543 = vmatprep.mubr.f32.mxu0 %v384_v16  ;;  %v859_v6 = vld [vmem:[#allocation5 + $0x230] sm:$0xff]  ;;  %v2060_v16 = vpack.c.bf16 %v864_v14, %v862_v13  ;;  %v703_v13 = vld [vmem:[#allocation5 + $0x1e0] sm:$0xff]  ;;  %v962_v22 = vld [vmem:[#allocation5 + $0x308] sm:$0xff] }
 0x147   : > { %1961 = vmatprep.subr.bf16.mxu0 %v1960_v24  ;;  %v2058_v11 = vpack.c.bf16 %v859_v6, %v857_v4  ;;  %v879_v4 = vld [vmem:[#allocation5 + $0x2d0] sm:$0xff]  ;;  %v704_v6 = vld [vmem:[#allocation5 + $0x1e8] sm:$0xff] }
 0x148   : > { %v705_v14 = vld [vmem:[#allocation5 + $0x1f0] sm:$0xff] }
 0x149   : > { %544 = vmatmul.mubr.f32.gmra.mrb[4].mxu0 %v396_v26  ;;  %2059 = vmatpush1.bf16.msra.mxu1 %v2058_v11  ;;  %v868_v26 = vld [vmem:[#allocation5 + $0x278] sm:$0xff]  ;;  %v2016_v11 = vpack.c.bf16 %v706_v7, %v704_v6  ;;  %v970_v7 = vld [vmem:[#allocation5 + $0x348] sm:$0xff] }
 0x14a   : > { %1963 = vmatpush3.bf16.msra.mxu0 %v1960_v24  ;;  %1897 = vmatprep.mubr.f32.mxu0 %v411_v27  ;;  %v2062_v24 = vpack.c.bf16 %v863_v19, %v861_v18  ;;  %v687_v27 = vld [vmem:[#allocation5 + $0x160] sm:$0xff]  ;;  %v2064_v29 = vpack.c.bf16 %v868_v26, %v866_v23  ;;  %v883_v18 = vld [vmem:[#allocation5 + $0x2f0] sm:$0xff]  ;;  %v2492_v23 = vmov 0.0   ;;  %v653_v6 = vld [vmem:[#allocation5 + $0x58] sm:$0xff] }
 0x14b   : > { %1965 = vmatprep.subr.bf16.mxu0 %v1964_v31  ;;  %2061 = vmatprep.subr.bf16.mxu1 %v2060_v16  ;;  %v2018_v16 = vpack.c.bf16 %v705_v14, %v703_v13  ;;  %v2082_v19 = vpack.c.bf16 %v883_v18, %v881_v17  ;;  %v650_v13 = vld [vmem:[#allocation5 + $0x40] sm:$0xff]  ;;  %v652_v14 = vld [vmem:[#allocation5 + $0x50] sm:$0xff] }
 0x14c   : > { %951 = vmatprep.mubr.f32.mxu1 %v2492_v23  ;;  %v969_v17 = vld [vmem:[#allocation5 + $0x340] sm:$0xff]  ;;  %v971_v18 = vld [vmem:[#allocation5 + $0x350] sm:$0xff] }
 0x14d   : > { %2063 = vmatpush1.bf16.msra.mxu1 %v2062_v24 }
 0x14e   : > { %1967 = vmatpush3.bf16.msra.mxu0 %v1964_v31  ;;  %v867_v31 = vld [vmem:[#allocation5 + $0x270] sm:$0xff]  ;;  %2065 = vmatprep.subr.bf16.mxu1 %v2064_v29 }
 0x14f   : > { %1969 = vmatprep.subr.bf16.mxu0 %v1968_v34 }
 0x152   : > { %1971 = vmatpush3.bf16.msra.mxu0 %v1968_v34  ;;  %v870_v34 = vld [vmem:[#allocation5 + $0x288] sm:$0xff] }
 0x153   : > { %1973 = vmatprep.subr.bf16.mxu0 %v1972_v37  ;;  %v2068_v39 = vpack.c.bf16 %v872_v35, %v870_v34 }
 0x156   : > { %1975 = vmatpush3.bf16.msra.mxu0 %v1972_v37  ;;  %v2066_v37 = vpack.c.bf16 %v867_v31, %v865_v30  ;;  %v472_v30 = vsub.s32 1, %v2696_v8 }
 0x157   : > { %1977 = vmatprep.subr.bf16.mxu0 %v1976_v40 }
 0x158   : > { %2067 = vmatpush1.bf16.msra.mxu1 %v2066_v37  ;;  %v473_v34 = vrot.slane %v2702_v10, %v472_v30  ;;  %v634_v37 = vsub.s32 3, %v2696_v8  ;;  %v973_v30 = vld [vmem:[#allocation5 + $0x360] sm:$0xff] }
 0x159   : > { %2069 = vmatprep.subr.bf16.mxu1 %v2068_v39 }
 0x15a   : > { %1979 = vmatpush3.bf16.msra.mxu0 %v1976_v40  ;;  %v691_v40 = vld [vmem:[#allocation5 + $0x180] sm:$0xff] }
 0x15b   : > { %1981 = vmatprep.subr.bf16.mxu0 %v1980_v43 }
 0x15c   : > { %2071 = vmatpush1.bf16.msra.mxu1 %v2070_v45  ;;  %v635_v45 = vrot.slane %v2702_v10, %v634_v37 }
 0x15d   : > { %2073 = vmatprep.subr.bf16.mxu1 %v2072_v53 }
 0x15e   : > { %1983 = vmatpush3.bf16.msra.mxu0 %v1980_v43  ;;  %v2006_v43 = vpack.c.bf16 %v693_v41, %v691_v40 }
 0x15f   : > { %1985 = vmatprep.subr.bf16.mxu0 %v1984_v46 }
 0x162   : > { %1987 = vmatpush3.bf16.msra.mxu0 %v1984_v46  ;;  %v696_v46 = vld [vmem:[#allocation5 + $0x1a8] sm:$0xff] }
 0x163   : > { %1989 = vmatprep.subr.bf16.mxu0 %v1988_v51  ;;  %v2008_v49 = vpack.c.bf16 %v698_v47, %v696_v46  ;;  %v695_v51 = vld [vmem:[#allocation5 + $0x1a0] sm:$0xff] }
 0x164   : > { %v2010_v54 = vpack.c.bf16 %v697_v52, %v695_v51  ;;  %v642_v51 = vld [vmem:[#allocation5] sm:$0xff]  ;;  %v644_v52 = vld [vmem:[#allocation5 + $0x10] sm:$0xff] }
 0x165   : > { %1898 = vmatmul.mubr.msk.f32.vlgmr.msra.gmra.mrb[6].mxu0 %vm1732_vm4, %v415_v28  ;;  %v689_v28 = vld [vmem:[#allocation5 + $0x170] sm:$0xff]  ;;  %v2022_v60 = vpack.c.bf16 %v644_v52, %v642_v51  ;;  %v662_v51 = vld [vmem:[#allocation5 + $0xa0] sm:$0xff] }
 0x166   : > { %1991 = vmatpush1.bf16.msra.mxu0 %v1990_v56  ;;  %v2002_v36 = vpack.c.bf16 %v689_v28, %v687_v27  ;;  %v875_v56 = vld [vmem:[#allocation5 + $0x2b0] sm:$0xff]  ;;  %774 = vmatprep.mubr.f32.mxu0 %v2492_v23 }
 0x167   : > { %1993 = vmatprep.subr.bf16.mxu0 %v1992_v0  ;;  %v2074_v57 = vpack.c.bf16 %v875_v56, %v873_v55  ;;  %v701_v0 = vld [vmem:[#allocation5 + $0x1d0] sm:$0xff]  ;;  %v647_v55 = vld [vmem:[#allocation5 + $0x28] sm:$0xff]  ;;  %v649_v56 = vld [vmem:[#allocation5 + $0x38] sm:$0xff] }
 0x168   : > { %v2014_v2 = vpack.c.bf16 %v701_v0, %v699_v63  ;;  %v664_v52 = vld [vmem:[#allocation5 + $0xb0] sm:$0xff] }
 0x169   : > { %2075 = vmatpush1.bf16.msra.mxu1 %v2074_v57  ;;  %v966_v57 = vld [vmem:[#allocation5 + $0x328] sm:$0xff] }
 0x16a   : > { %1995 = vmatpush1.bf16.msra.mxu0 %v1994_v5  ;;  %v2078_v5 = vpack.c.bf16 %v879_v4, %v877_v3  ;;  %2077 = vmatprep.subr.bf16.mxu1 %v2076_v1  ;;  %v2024_v1 = vpack.c.bf16 %v649_v56, %v647_v55  ;;  %v965_v3 = vld [vmem:[#allocation5 + $0x320] sm:$0xff]  ;;  %v967_v4 = vld [vmem:[#allocation5 + $0x330] sm:$0xff]  ;;  %v667_v56 = vld [vmem:[#allocation5 + $0xc8] sm:$0xff] }
 0x16b   : > { %1997 = vmatprep.subr.bf16.mxu0 %v1996_v12  ;;  %v884_v12 = vld [vmem:[#allocation5 + $0x2f8] sm:$0xff]  ;;  %v983_v55 = vld [vmem:[#allocation5 + $0x3b0] sm:$0xff] }
 0x16c   : > { %v2080_v15 = vpack.c.bf16 %v884_v12, %v882_v9  ;;  %v972_v9 = vld [vmem:[#allocation5 + $0x358] sm:$0xff]  ;;  %v2090_v12 = vpack.c.bf16 %v967_v4, %v965_v3  ;;  %v987_v3 = vld [vmem:[#allocation5 + $0x3d0] sm:$0xff]  ;;  %v671_v4 = vld [vmem:[#allocation5 + $0xe8] sm:$0xff] }
 0x16d   : > { %2079 = vmatpush1.bf16.msra.mxu1 %v2078_v5  ;;  %v651_v5 = vld [vmem:[#allocation5 + $0x48] sm:$0xff] }
 0x16e   : > { %1999 = vmatpush1.bf16.msra.mxu0 %v1998_v20  ;;  %2081 = vmatprep.subr.bf16.mxu1 %v2080_v15  ;;  %v643_v20 = vld [vmem:[#allocation5 + $0x8] sm:$0xff]  ;;  %v2028_v15 = vpack.c.bf16 %v653_v6, %v651_v5  ;;  %v673_v5 = vld [vmem:[#allocation5 + $0xf8] sm:$0xff] }
 0x16f   : > { %2001 = vmatprep.subr.bf16.mxu0 %v2000_v25  ;;  %v2020_v24 = vpack.c.bf16 %v645_v21, %v643_v20  ;;  %v964_v25 = vld [vmem:[#allocation5 + $0x318] sm:$0xff]  ;;  %v974_v21 = vld [vmem:[#allocation5 + $0x368] sm:$0xff] }
 0x170   : > { %v2084_v26 = vpack.c.bf16 %v964_v25, %v962_v22  ;;  %v657_v20 = vld [vmem:[#allocation5 + $0x78] sm:$0xff]  ;;  %v2094_v25 = vpack.c.bf16 %v971_v18, %v969_v17  ;;  %v990_v6 = vld [vmem:[#allocation5 + $0x3e8] sm:$0xff]  ;;  %v991_v17 = vld [vmem:[#allocation5 + $0x3f0] sm:$0xff] }
 0x171   : > { %2083 = vmatpush1.bf16.msra.mxu1 %v2082_v19  ;;  %v655_v19 = vld [vmem:[#allocation5 + $0x68] sm:$0xff]  ;;  %v976_v22 = vld [vmem:[#allocation5 + $0x378] sm:$0xff] }
 0x172   : > { %2003 = vmatpush1.bf16.msra.mxu0 %v2002_v36  ;;  %2085 = vmatprep.subr.bf16.mxu1 %v2084_v26  ;;  %v628_v36 = vsub.s32 2, %v2696_v8  ;;  %v961_v8 = vld [vmem:[#allocation5 + $0x300] sm:$0xff]  ;;  %v1074_v18 = vld [vmem:[#allocation5 + $0x408] sm:$0xff] }
 0x173   : > { %2005 = vmatprep.subr.bf16.mxu0 %v2004_v38  ;;  %v654_v26 = vld [vmem:[#allocation5 + $0x60] sm:$0xff] }
 0x174   : > { %v629_v41 = vrot.slane %v2702_v10, %v628_v36  ;;  %v646_v10 = vld [vmem:[#allocation5 + $0x20] sm:$0xff] }
 0x176   : > { %2007 = vmatpush1.bf16.msra.mxu0 %v2006_v43 }
 0x177   : > { %2009 = vmatprep.subr.bf16.mxu0 %v2008_v49 }
 0x17a   : > { %2011 = vmatpush1.bf16.msra.mxu0 %v2010_v54  ;;  %v963_v54 = vld [vmem:[#allocation5 + $0x310] sm:$0xff] }
 0x17b   : > { %2013 = vmatprep.subr.bf16.mxu0 %v2012_v61  ;;  %v2086_v61 = vpack.c.bf16 %v963_v54, %v961_v8  ;;  %v981_v54 = vld [vmem:[#allocation5 + $0x3a0] sm:$0xff] }
 0x17e   : > { %2015 = vmatpush1.bf16.msra.mxu0 %v2014_v2  ;;  %v2088_v2 = vpack.c.bf16 %v968_v58, %v966_v57  ;;  %v669_v57 = vld [vmem:[#allocation5 + $0xd8] sm:$0xff]  ;;  %v986_v58 = vld [vmem:[#allocation5 + $0x3c8] sm:$0xff] }
 0x17f   : > { %2017 = vmatprep.subr.bf16.mxu0 %v2016_v11  ;;  %v2026_v11 = vpack.c.bf16 %v648_v62, %v646_v10  ;;  %v2106_v10 = vpack.c.bf16 %v983_v55, %v981_v54  ;;  %v666_v62 = vld [vmem:[#allocation5 + $0xc0] sm:$0xff]  ;;  %v1095_v55 = vld [vmem:[#allocation5 + $0x4b0] sm:$0xff] }
 0x180   : > { %v1093_v54 = vld [vmem:[#allocation5 + $0x4a0] sm:$0xff] }
 0x182   : > { %2019 = vmatpush1.bf16.msra.mxu0 %v2018_v16  ;;  %v2092_v16 = vpack.c.bf16 %v972_v9, %v970_v7  ;;  %v992_v7 = vld [vmem:[#allocation5 + $0x3f8] sm:$0xff] }
 0x183   : > { %2021 = vmatprep.subr.bf16.mxu0 %v2020_v24  ;;  %v2030_v24 = vpack.c.bf16 %v652_v14, %v650_v13  ;;  %v2048_v13 = vpack.c.bf16 %v673_v5, %v671_v4  ;;  %v2112_v14 = vpack.c.bf16 %v992_v7, %v990_v6  ;;  %v1180_v4 = vld [vmem:[#allocation5 + $0x508] sm:$0xff]  ;;  %v1182_v5 = vld [vmem:[#allocation5 + $0x518] sm:$0xff] }
 0x218   : > { %v1779_v27 = vpop.f32.mrb[2].mxu0 }
 0x219   : > { %v1780_v28 = vpop.f32.mrb[3].mxu0 }
 0x21a   : > { %v1781_v29 = vadd.f32 %v1780_v28, %v1779_v27  ;;  %v656_v27 = vld [vmem:[#allocation5 + $0x70] sm:$0xff]  ;;  %v2032_v28 = vpack.c.bf16 %v657_v20, %v655_v19  ;;  %v1076_v19 = vld [vmem:[#allocation5 + $0x418] sm:$0xff] }
 0x21b   : > { %v2034_v36 = vpack.c.bf16 %v656_v27, %v654_v26  ;;  %v1078_v26 = vld [vmem:[#allocation5 + $0x428] sm:$0xff]  ;;  %v1080_v27 = vld [vmem:[#allocation5 + $0x438] sm:$0xff] }
 0x21c   : > { %v1782_v31 = vpop.f32.mrb[4].mxu0  ;;  %v541_v39 = vadd.f32 %v1781_v29, %v473_v34  ;;  %v2096_v29 = vpack.c.bf16 %v976_v22, %v974_v21  ;;  %v2116_v22 = vpack.c.bf16 %v1076_v19, %v1074_v18  ;;  %v1183_v18 = vld [vmem:[#allocation5 + $0x520] sm:$0xff]  ;;  %v1185_v19 = vld [vmem:[#allocation5 + $0x530] sm:$0xff] }
 0x21d   : > { %v1783_v32 = vpop.f32.mrb[5].mxu0 }
 0x21e   : > { %v1784_v33 = vadd.f32 %v1783_v32, %v1782_v31  ;;  %v975_v31 = vld [vmem:[#allocation5 + $0x370] sm:$0xff]  ;;  %v659_v32 = vld [vmem:[#allocation5 + $0x88] sm:$0xff] }
 0x21f   : > { %v2098_v37 = vpack.c.bf16 %v975_v31, %v973_v30  ;;  %v2120_v30 = vpack.c.bf16 %v1080_v27, %v1078_v26  ;;  %v1077_v31 = vld [vmem:[#allocation5 + $0x420] sm:$0xff]  ;;  %v1189_v26 = vld [vmem:[#allocation5 + $0x550] sm:$0xff]  ;;  %v1192_v27 = vld [vmem:[#allocation5 + $0x568] sm:$0xff] }
 0x220   : > { %v546_v35 = vadd.f32 %v1784_v33, %v473_v34  ;;  %v661_v33 = vld [vmem:[#allocation5 + $0x98] sm:$0xff]  ;;  %v978_v34 = vld [vmem:[#allocation5 + $0x388] sm:$0xff] }
 0x238   : > { %v1899_v38 = vpop.f32.mrb[6].mxu0 }
 0x239   : > { %v621_v40 = vadd.f32 %v1899_v38, %v546_v35  ;;  %v615_v42 = vpop.f32.mrb[7].mxu0  ;;  %v980_v35 = vld [vmem:[#allocation5 + $0x398] sm:$0xff]  ;;  %v658_v38 = vld [vmem:[#allocation5 + $0x80] sm:$0xff] }
 0x23a   : > { %v616_v43 = vadd.f32 %v615_v42, %v541_v39  ;;  %v660_v39 = vld [vmem:[#allocation5 + $0x90] sm:$0xff]  ;;  %v977_v42 = vld [vmem:[#allocation5 + $0x380] sm:$0xff] }
 0x23b   : > { %v625_v44 = vmax.f32 %v621_v40, 0.0  ;;  %v2036_v40 = vpack.c.bf16 %v661_v33, %v659_v32  ;;  %v1079_v32 = vld [vmem:[#allocation5 + $0x430] sm:$0xff]  ;;  %v1082_v33 = vld [vmem:[#allocation5 + $0x448] sm:$0xff] }
 0x23c   : > { %v624_v46 = vmax.f32 %v616_v43, 0.0  ;;  %v979_v43 = vld [vmem:[#allocation5 + $0x390] sm:$0xff] }
 0x23d   : > { %v631_v47 = vmul.f32 %v629_v41, %v625_v44  ;;  %v663_v44 = vld [vmem:[#allocation5 + $0xa8] sm:$0xff] }
 0x23e   : > { %v630_v48 = vmul.f32 %v629_v41, %v624_v46  ;;  %v2100_v41 = vpack.c.bf16 %v980_v35, %v978_v34  ;;  %v982_v46 = vld [vmem:[#allocation5 + $0x3a8] sm:$0xff]  ;;  %v1084_v34 = vld [vmem:[#allocation5 + $0x458] sm:$0xff]  ;;  %v2122_v35 = vpack.c.bf16 %v1079_v32, %v1077_v31  ;;  %v1193_v31 = vld [vmem:[#allocation5 + $0x570] sm:$0xff] }
 0x23f   : > { %v2715_v49 = vadd.f32 %v635_v45, %v631_v47  ;;  %v984_v47 = vld [vmem:[#allocation5 + $0x3b8] sm:$0xff]  ;;  %v1196_v32 = vld [vmem:[#allocation5 + $0x588] sm:$0xff] }
 0x240   : > { %v636_v50 = vadd.f32 %v635_v45, %v630_v48  ;;  %v665_v45 = vld [vmem:[#allocation5 + $0xb8] sm:$0xff]  ;;  %v2038_v48 = vpack.c.bf16 %v660_v39, %v658_v38  ;;  %v2104_v8 = vpack.c.bf16 %v984_v47, %v982_v46  ;;  %v1083_v38 = vld [vmem:[#allocation5 + $0x450] sm:$0xff]  ;;  %v1086_v39 = vld [vmem:[#allocation5 + $0x468] sm:$0xff] }
 0x241   : > { %v1092_v46 = vld [vmem:[#allocation5 + $0x498] sm:$0xff]  ;;  %v1069_v7 = vrot.slane %v2715_v49, 1 }
 0x242   : > { %v639_v53 = vrot.slane %v636_v50, 1 }
 0x244   : > { %v2717_v59 = vmax.f32 %v636_v50, %v639_v53  ;;  %v2102_v50 = vpack.c.bf16 %v979_v43, %v977_v42  ;;  %v2040_v53 = vpack.c.bf16 %v665_v45, %v663_v44  ;;  %v1085_v43 = vld [vmem:[#allocation5 + $0x460] sm:$0xff]  ;;  %v1087_v44 = vld [vmem:[#allocation5 + $0x470] sm:$0xff]  ;;  %v1090_v45 = vld [vmem:[#allocation5 + $0x488] sm:$0xff] }
 0x245   : > { %v2132_v47 = vpack.c.bf16 %v1092_v46, %v1090_v45  ;;  %v1206_v45 = vld [vmem:[#allocation5 + $0x5d8] sm:$0xff] }
 0x246   : > { %v708_v63 = vrot.slane %v2717_v59, 2  ;;  %v885_v0 = vrot.slane %v2717_v59, 4 }
 0x248   : > { %775 = vmatmul.mubr.f32.vlgmr.msra.gmra.mrb[8].mxu0 %v708_v63  ;;  %952 = vmatmul.mubr.f32.vlgmr.msra.gmra.mrb[0].mxu1 %v885_v0  ;;  %v668_v63 = vld [vmem:[#allocation5 + $0xd0] sm:$0xff]  ;;  %v2044_v0 = vpack.c.bf16 %v669_v57, %v667_v56  ;;  %v1098_v56 = vld [vmem:[#allocation5 + $0x4c8] sm:$0xff]  ;;  %v1100_v57 = vld [vmem:[#allocation5 + $0x4d8] sm:$0xff] }
 0x249   : > { %2023 = vmatpush1.bf16.msra.mxu0 %v2022_v60  ;;  %2087 = vmatpush1.bf16.msra.mxu1 %v2086_v61  ;;  %v988_v60 = vld [vmem:[#allocation5 + $0x3d8] sm:$0xff]  ;;  %v2042_v61 = vpack.c.bf16 %v664_v52, %v662_v51  ;;  %v2046_v9 = vpack.c.bf16 %v668_v63, %v666_v62  ;;  %v1094_v51 = vld [vmem:[#allocation5 + $0x4a8] sm:$0xff] }
 0x24a   : > { %2025 = vmatprep.subr.bf16.mxu0 %v2024_v1  ;;  %2089 = vmatprep.subr.bf16.mxu1 %v2088_v2  ;;  %v2108_v1 = vpack.c.bf16 %v988_v60, %v986_v58  ;;  %v985_v2 = vld [vmem:[#allocation5 + $0x3c0] sm:$0xff]  ;;  %v1096_v52 = vld [vmem:[#allocation5 + $0x4b8] sm:$0xff]  ;;  %v2138_v58 = vpack.c.bf16 %v1095_v55, %v1093_v54  ;;  %v2140_v60 = vpack.c.bf16 %v1100_v57, %v1098_v56  ;;  %v1102_v62 = vld [vmem:[#allocation5 + $0x4e8] sm:$0xff] }
 0x24b   : > { %845 = vmatprep.mubr.f32.mxu0 %v2492_v23  ;;  %1059 = vmatprep.mubr.f32.mxu1 %v2492_v23  ;;  %v1104_v63 = vld [vmem:[#allocation5 + $0x4f8] sm:$0xff]  ;;  %v1209_v54 = vld [vmem:[#allocation5 + $0x5f0] sm:$0xff]  ;;  %v1289_v55 = vld [vmem:[#allocation5 + $0x608] sm:$0xff] }
 0x24c   : > { %v1291_v56 = vld [vmem:[#allocation5 + $0x618] sm:$0xff] }
 0x24d   : > { %2027 = vmatpush1.bf16.msra.mxu0 %v2026_v11  ;;  %2091 = vmatpush1.bf16.msra.mxu1 %v2090_v12  ;;  %v2110_v11 = vpack.c.bf16 %v987_v3, %v985_v2  ;;  %v670_v12 = vld [vmem:[#allocation5 + $0xe0] sm:$0xff]  ;;  %v1103_v3 = vld [vmem:[#allocation5 + $0x4f0] sm:$0xff] }
 0x24e   : > { %2029 = vmatprep.subr.bf16.mxu0 %v2028_v15  ;;  %2093 = vmatprep.subr.bf16.mxu1 %v2092_v16  ;;  %v672_v15 = vld [vmem:[#allocation5 + $0xf0] sm:$0xff]  ;;  %v989_v16 = vld [vmem:[#allocation5 + $0x3e0] sm:$0xff] }
 0x24f   : > { %v2050_v20 = vpack.c.bf16 %v672_v15, %v670_v12  ;;  %v2114_v21 = vpack.c.bf16 %v991_v17, %v989_v16  ;;  %v1101_v2 = vld [vmem:[#allocation5 + $0x4e0] sm:$0xff]  ;;  %v1181_v12 = vld [vmem:[#allocation5 + $0x510] sm:$0xff]  ;;  %v2728_v16 = vmax.f32 %v2715_v49, %v1069_v7 }
 0x250   : > { %v2146_v6 = vpack.c.bf16 %v1103_v3, %v1101_v2  ;;  %v1292_v2 = vld [vmem:[#allocation5 + $0x620] sm:$0xff]  ;;  %v1294_v3 = vld [vmem:[#allocation5 + $0x630] sm:$0xff] }
 0x251   : > { %2031 = vmatpush1.bf16.msra.mxu0 %v2030_v24  ;;  %2095 = vmatpush1.bf16.msra.mxu1 %v2094_v25  ;;  %v1073_v24 = vld [vmem:[#allocation5 + $0x400] sm:$0xff]  ;;  %v1075_v25 = vld [vmem:[#allocation5 + $0x410] sm:$0xff] }
 0x252   : > { %2033 = vmatprep.subr.bf16.mxu0 %v2032_v28  ;;  %2097 = vmatprep.subr.bf16.mxu1 %v2096_v29  ;;  %v2118_v28 = vpack.c.bf16 %v1075_v25, %v1073_v24  ;;  %v993_v29 = vrot.slane %v2717_v59, 6  ;;  %v1187_v25 = vld [vmem:[#allocation5 + $0x540] sm:$0xff] }
 0x253   : > { %v2158_v49 = vpack.c.bf16 %v1189_v26, %v1187_v25  ;;  %v1306_v25 = vld [vmem:[#allocation5 + $0x690] sm:$0xff]  ;;  %v1309_v26 = vld [vmem:[#allocation5 + $0x6a8] sm:$0xff] }
 0x255   : > { %2035 = vmatpush1.bf16.msra.mxu0 %v2034_v36  ;;  %2099 = vmatpush1.bf16.msra.mxu1 %v2098_v37  ;;  %v2124_v36 = vpack.c.bf16 %v1084_v34, %v1082_v33  ;;  %v1081_v37 = vld [vmem:[#allocation5 + $0x440] sm:$0xff]  ;;  %v1198_v33 = vld [vmem:[#allocation5 + $0x598] sm:$0xff] }
 0x256   : > { %2037 = vmatprep.subr.bf16.mxu0 %v2036_v40  ;;  %2101 = vmatprep.subr.bf16.mxu1 %v2100_v41  ;;  %v1088_v40 = vld [vmem:[#allocation5 + $0x478] sm:$0xff]  ;;  %v2126_v41 = vpack.c.bf16 %v1083_v38, %v1081_v37  ;;  %v1197_v37 = vld [vmem:[#allocation5 + $0x590] sm:$0xff]  ;;  %v1200_v38 = vld [vmem:[#allocation5 + $0x5a8] sm:$0xff] }
 0x257   : > { %v2128_v42 = vpack.c.bf16 %v1088_v40, %v1086_v39  ;;  %v1202_v39 = vld [vmem:[#allocation5 + $0x5b8] sm:$0xff] }
 0x259   : > { %2039 = vmatpush1.bf16.msra.mxu0 %v2038_v48  ;;  %2103 = vmatpush1.bf16.msra.mxu1 %v2102_v50  ;;  %v1089_v48 = vld [vmem:[#allocation5 + $0x480] sm:$0xff]  ;;  %v1091_v50 = vld [vmem:[#allocation5 + $0x490] sm:$0xff] }
 0x25a   : > { %2041 = vmatprep.subr.bf16.mxu0 %v2040_v53  ;;  %2105 = vmatprep.subr.bf16.mxu1 %v2104_v8  ;;  %v2134_v53 = vpack.c.bf16 %v1091_v50, %v1089_v48  ;;  %v2136_v8 = vpack.c.bf16 %v1096_v52, %v1094_v51  ;;  %v1205_v48 = vld [vmem:[#allocation5 + $0x5d0] sm:$0xff]  ;;  %v1208_v50 = vld [vmem:[#allocation5 + $0x5e8] sm:$0xff]  ;;  %v1210_v51 = vld [vmem:[#allocation5 + $0x5f8] sm:$0xff] }
 0x25d   : > { %2043 = vmatpush1.bf16.msra.mxu0 %v2042_v61  ;;  %2107 = vmatpush1.bf16.msra.mxu1 %v2106_v10  ;;  %v1097_v61 = vld [vmem:[#allocation5 + $0x4c0] sm:$0xff]  ;;  %v1099_v10 = vld [vmem:[#allocation5 + $0x4d0] sm:$0xff] }
 0x25e   : > { %2045 = vmatprep.subr.bf16.mxu0 %v2044_v0  ;;  %2109 = vmatprep.subr.bf16.mxu1 %v2108_v1  ;;  %v2142_v0 = vpack.c.bf16 %v1099_v10, %v1097_v61  ;;  %v2144_v1 = vpack.c.bf16 %v1104_v63, %v1102_v62  ;;  %v1290_v61 = vld [vmem:[#allocation5 + $0x610] sm:$0xff]  ;;  %v1293_v10 = vld [vmem:[#allocation5 + $0x628] sm:$0xff]  ;;  %v1295_v62 = vld [vmem:[#allocation5 + $0x638] sm:$0xff] }
 0x261   : > { %2047 = vmatpush1.bf16.msra.mxu0 %v2046_v9  ;;  %2111 = vmatpush1.bf16.msra.mxu1 %v2110_v11  ;;  %v2148_v9 = vpack.c.bf16 %v1182_v5, %v1180_v4  ;;  %v1179_v11 = vld [vmem:[#allocation5 + $0x500] sm:$0xff]  ;;  %v1297_v4 = vld [vmem:[#allocation5 + $0x648] sm:$0xff]  ;;  %v1299_v5 = vld [vmem:[#allocation5 + $0x658] sm:$0xff] }
 0x262   : > { %2049 = vmatprep.subr.bf16.mxu0 %v2048_v13  ;;  %2113 = vmatprep.subr.bf16.mxu1 %v2112_v14  ;;  %v1184_v13 = vld [vmem:[#allocation5 + $0x528] sm:$0xff]  ;;  %v1186_v14 = vld [vmem:[#allocation5 + $0x538] sm:$0xff]  ;;  %v2150_v15 = vpack.c.bf16 %v1181_v12, %v1179_v11  ;;  %v2188_v7 = vpack.c.bf16 %v1299_v5, %v1297_v4  ;;  %v1298_v11 = vld [vmem:[#allocation5 + $0x650] sm:$0xff] }
 0x263   : > { %v2152_v17 = vpack.c.bf16 %v1186_v14, %v1184_v13  ;;  %v1301_v12 = vld [vmem:[#allocation5 + $0x668] sm:$0xff]  ;;  %v1303_v13 = vld [vmem:[#allocation5 + $0x678] sm:$0xff] }
 0x264   : > { %v1536_v4 = vld [vmem:[%s2890_s4 + $0xb8] sm:$0xff] }
 0x265   : > { %2051 = vmatpush1.bf16.msra.mxu0 %v2050_v20  ;;  %2115 = vmatpush1.bf16.msra.mxu1 %v2114_v21  ;;  %v1188_v20 = vld [vmem:[#allocation5 + $0x548] sm:$0xff]  ;;  %v1190_v21 = vld [vmem:[#allocation5 + $0x558] sm:$0xff] }
 0x266   : > { %2117 = vmatprep.subr.bf16.mxu1 %v2116_v22  ;;  %v2154_v22 = vpack.c.bf16 %v1185_v19, %v1183_v18  ;;  %v2156_v24 = vpack.c.bf16 %v1190_v21, %v1188_v20  ;;  %v1302_v18 = vld [vmem:[#allocation5 + $0x670] sm:$0xff]  ;;  %v1305_v19 = vld [vmem:[#allocation5 + $0x688] sm:$0xff]  ;;  %v1307_v20 = vld [vmem:[#allocation5 + $0x698] sm:$0xff] }
 0x268   : > { %846 = vmatmul.mubr.f32.vlgmr.msra.gmra.mrb[8].mxu0 %v2717_v59  ;;  %1060 = vmatmul.mubr.f32.vlgmr.msra.gmra.mrb[0].mxu1 %v993_v29  ;;  %v2130_v59 = vpack.c.bf16 %v1087_v44, %v1085_v43  ;;  %v1201_v43 = vld [vmem:[#allocation5 + $0x5b0] sm:$0xff]  ;;  %v1204_v44 = vld [vmem:[#allocation5 + $0x5c8] sm:$0xff] }
 0x269   : > { %2119 = vmatpush1.bf16.msra.mxu1 %v2118_v28  ;;  %1169 = vmatprep.mubr.f32.mxu1 %v2492_v23  ;;  %v1194_v28 = vld [vmem:[#allocation5 + $0x578] sm:$0xff] }
 0x26a   : > { %2121 = vmatprep.subr.bf16.mxu1 %v2120_v30  ;;  %v2160_v29 = vpack.c.bf16 %v1194_v28, %v1192_v27  ;;  %v1191_v30 = vld [vmem:[#allocation5 + $0x560] sm:$0xff]  ;;  %v1311_v27 = vld [vmem:[#allocation5 + $0x6b8] sm:$0xff] }
 0x26b   : > { %v2162_v34 = vpack.c.bf16 %v1193_v31, %v1191_v30  ;;  %v1310_v30 = vld [vmem:[#allocation5 + $0x6b0] sm:$0xff]  ;;  %v1313_v31 = vld [vmem:[#allocation5 + $0x6c8] sm:$0xff] }
 0x26d   : > { %2123 = vmatpush1.bf16.msra.mxu1 %v2122_v35  ;;  %v2164_v35 = vpack.c.bf16 %v1198_v33, %v1196_v32  ;;  %v1315_v32 = vld [vmem:[#allocation5 + $0x6d8] sm:$0xff] }
 0x26e   : > { %2125 = vmatprep.subr.bf16.mxu1 %v2124_v36  ;;  %v1195_v36 = vld [vmem:[#allocation5 + $0x580] sm:$0xff] }
 0x26f   : > { %v2166_v40 = vpack.c.bf16 %v1197_v37, %v1195_v36  ;;  %v1314_v36 = vld [vmem:[#allocation5 + $0x6d0] sm:$0xff]  ;;  %v1317_v37 = vld [vmem:[#allocation5 + $0x6e8] sm:$0xff] }
 0x271   : > { %2127 = vmatpush1.bf16.msra.mxu1 %v2126_v41  ;;  %v2168_v41 = vpack.c.bf16 %v1202_v39, %v1200_v38  ;;  %v1319_v38 = vld [vmem:[#allocation5 + $0x6f8] sm:$0xff]  ;;  %v1316_v39 = vld [vmem:[#allocation5 + $0x6e0] sm:$0xff] }
 0x272   : > { %2129 = vmatprep.subr.bf16.mxu1 %v2128_v42  ;;  %v1199_v42 = vld [vmem:[#allocation5 + $0x5a0] sm:$0xff] }
 0x273   : > { %v2170_v46 = vpack.c.bf16 %v1201_v43, %v1199_v42  ;;  %v1530_v42 = vld [vmem:[%s2890_s4 + $0x88] sm:$0xff]  ;;  %v1513_v43 = vld [vmem:[%s2890_s4] sm:$0xff] }
 0x275   : > { %2131 = vmatpush1.bf16.msra.mxu1 %v2130_v59  ;;  %v2172_v59 = vpack.c.bf16 %v1206_v45, %v1204_v44 }
 0x276   : > { %2133 = vmatprep.subr.bf16.mxu1 %v2132_v47  ;;  %v1203_v47 = vld [vmem:[#allocation5 + $0x5c0] sm:$0xff] }
 0x277   : > { %v2174_v52 = vpack.c.bf16 %v1205_v48, %v1203_v47  ;;  %v1532_v47 = vld [vmem:[%s2890_s4 + $0x98] sm:$0xff]  ;;  %v2208_v48 = vpack.c.bf16 %v1319_v38, %v1317_v37  ;;  %v1408_v38 = vld [vmem:[#allocation5 + $0x760] sm:$0xff] }
 0x279   : > { %2135 = vmatpush1.bf16.msra.mxu1 %v2134_v53  ;;  %v2176_v53 = vpack.c.bf16 %v1210_v51, %v1208_v50 }
 0x27a   : > { %2137 = vmatprep.subr.bf16.mxu1 %v2136_v8  ;;  %v1207_v8 = vld [vmem:[#allocation5 + $0x5e0] sm:$0xff] }
 0x27b   : > { %v2178_v57 = vpack.c.bf16 %v1209_v54, %v1207_v8  ;;  %v1533_v8 = vld [vmem:[%s2890_s4 + $0xa0] sm:$0xff]  ;;  %v1397_v54 = vld [vmem:[#allocation5 + $0x708] sm:$0xff] }
 0x27d   : > { %2139 = vmatpush1.bf16.msra.mxu1 %v2138_v58  ;;  %v2180_v58 = vpack.c.bf16 %v1291_v56, %v1289_v55  ;;  %v1399_v55 = vld [vmem:[#allocation5 + $0x718] sm:$0xff]  ;;  %v1534_v56 = vld [vmem:[%s2890_s4 + $0xa8] sm:$0xff] }
 0x27e   : > { %2141 = vmatprep.subr.bf16.mxu1 %v2140_v60  ;;  %v1288_v60 = vld [vmem:[#allocation5 + $0x600] sm:$0xff] }
 0x27f   : > { %v2182_v63 = vpack.c.bf16 %v1290_v61, %v1288_v60  ;;  %v2252_v60 = vpack.c.bf16 %v1534_v56, %v1533_v8  ;;  %v1517_v61 = vld [vmem:[%s2890_s4 + $0x20] sm:$0xff]  ;;  %v1423_v8 = vld [vmem:[#allocation5 + $0x7d8] sm:$0xff] }
 0x280   : > { %v1420_v56 = vld [vmem:[#allocation5 + $0x7c0] sm:$0xff] }
 0x281   : > { %2143 = vmatpush1.bf16.msra.mxu1 %v2142_v0  ;;  %v1212_v0 = vrot.slane %v2728_v16, 2 }
 0x282   : > { %2145 = vmatprep.subr.bf16.mxu1 %v2144_v1  ;;  %v2184_v1 = vpack.c.bf16 %v1295_v62, %v1293_v10  ;;  %v1518_v10 = vld [vmem:[%s2890_s4 + $0x28] sm:$0xff]  ;;  %v2212_v62 = vpack.c.bf16 %v1399_v55, %v1397_v54 }
 0x283   : > { %v2254_v5 = vpack.c.bf16 %v1518_v10, %v1517_v61 }
 0x285   : > { %2147 = vmatpush1.bf16.msra.mxu1 %v2146_v6  ;;  %v2186_v6 = vpack.c.bf16 %v1294_v3, %v1292_v2  ;;  %v1403_v2 = vld [vmem:[#allocation5 + $0x738] sm:$0xff]  ;;  %v1535_v3 = vld [vmem:[%s2890_s4 + $0xb0] sm:$0xff] }
 0x286   : > { %2149 = vmatprep.subr.bf16.mxu1 %v2148_v9  ;;  %v1296_v9 = vld [vmem:[#allocation5 + $0x640] sm:$0xff] }
 0x287   : > { %v2190_v14 = vpack.c.bf16 %v1298_v11, %v1296_v9  ;;  %v1519_v9 = vld [vmem:[%s2890_s4 + $0x30] sm:$0xff]  ;;  %v1520_v11 = vld [vmem:[%s2890_s4 + $0x38] sm:$0xff] }
 0x288   : > { %1170 = vmatmul.mubr.f32.vlgmr.msra.gmra.mrb[0].mxu1 %v2728_v16 }
 0x289   : > { %2151 = vmatpush1.bf16.msra.mxu1 %v2150_v15  ;;  %1278 = vmatprep.mubr.f32.mxu1 %v2492_v23  ;;  %v2192_v15 = vpack.c.bf16 %v1303_v13, %v1301_v12  ;;  %v1320_v12 = vrot.slane %v2728_v16, 4 }
 0x28a   : > { %2153 = vmatprep.subr.bf16.mxu1 %v2152_v17  ;;  %v1300_v17 = vld [vmem:[#allocation5 + $0x660] sm:$0xff] }
 0x28b   : > { %v2194_v21 = vpack.c.bf16 %v1302_v18, %v1300_v17  ;;  %v1537_v17 = vld [vmem:[%s2890_s4 + $0xc0] sm:$0xff]  ;;  %v1538_v18 = vld [vmem:[%s2890_s4 + $0xc8] sm:$0xff] }
 0x28d   : > { %2155 = vmatpush1.bf16.msra.mxu1 %v2154_v22  ;;  %v2196_v22 = vpack.c.bf16 %v1307_v20, %v1305_v19  ;;  %v1405_v19 = vld [vmem:[#allocation5 + $0x748] sm:$0xff]  ;;  %v1407_v20 = vld [vmem:[#allocation5 + $0x758] sm:$0xff] }
 0x28e   : > { %2157 = vmatprep.subr.bf16.mxu1 %v2156_v24  ;;  %v1304_v24 = vld [vmem:[#allocation5 + $0x680] sm:$0xff] }
 0x28f   : > { %v2198_v28 = vpack.c.bf16 %v1306_v25, %v1304_v24  ;;  %v1404_v24 = vld [vmem:[#allocation5 + $0x740] sm:$0xff]  ;;  %v2260_v25 = vpack.c.bf16 %v1538_v18, %v1537_v17  ;;  %v2493_v18 = vmov 0  }
 0x290   : > { %2356 = vset.pattern.permute.xlu0 %v2493_v18 }
 0x291   : > { %2159 = vmatpush1.bf16.msra.mxu1 %v2158_v49  ;;  %v2200_v49 = vpack.c.bf16 %v1311_v27, %v1309_v26  ;;  %v1521_v26 = vld [vmem:[%s2890_s4 + $0x40] sm:$0xff]  ;;  %v1522_v27 = vld [vmem:[%s2890_s4 + $0x48] sm:$0xff] }
 0x292   : > { %2161 = vmatprep.subr.bf16.mxu1 %v2160_v29  ;;  %v1308_v29 = vld [vmem:[#allocation5 + $0x6a0] sm:$0xff] }
 0x293   : > { %v2202_v33 = vpack.c.bf16 %v1310_v30, %v1308_v29  ;;  %v1539_v29 = vld [vmem:[%s2890_s4 + $0xd0] sm:$0xff]  ;;  %v1409_v30 = vld [vmem:[#allocation5 + $0x768] sm:$0xff] }
 0x295   : > { %2163 = vmatpush1.bf16.msra.mxu1 %v2162_v34  ;;  %v2204_v34 = vpack.c.bf16 %v1315_v32, %v1313_v31  ;;  %v1411_v31 = vld [vmem:[#allocation5 + $0x778] sm:$0xff]  ;;  %v2262_v32 = vpack.c.bf16 %v1522_v27, %v1521_v26 }
 0x296   : > { %2165 = vmatprep.subr.bf16.mxu1 %v2164_v35  ;;  %v1312_v35 = vld [vmem:[#allocation5 + $0x6c0] sm:$0xff]  ;;  %v2224_v37 = vpack.c.bf16 %v1411_v31, %v1409_v30 }
 0x297   : > { %v2206_v44 = vpack.c.bf16 %v1314_v36, %v1312_v35  ;;  %v1523_v35 = vld [vmem:[%s2890_s4 + $0x50] sm:$0xff]  ;;  %v1524_v36 = vld [vmem:[%s2890_s4 + $0x58] sm:$0xff] }
 0x299   : > { %2167 = vmatpush1.bf16.msra.mxu1 %v2166_v40  ;;  %v1318_v40 = vld [vmem:[#allocation5 + $0x6f0] sm:$0xff] }
 0x29a   : > { %2169 = vmatprep.subr.bf16.mxu1 %v2168_v41  ;;  %v1529_v41 = vld [vmem:[%s2890_s4 + $0x80] sm:$0xff] }
 0x29b   : > { %v2244_v45 = vpack.c.bf16 %v1530_v42, %v1529_v41  ;;  %v1415_v41 = vld [vmem:[#allocation5 + $0x798] sm:$0xff]  ;;  %v2266_v42 = vpack.c.bf16 %v1524_v36, %v1523_v35 }
 0x29d   : > { %2171 = vmatpush1.bf16.msra.mxu1 %v2170_v46  ;;  %v1514_v46 = vld [vmem:[%s2890_s4 + $0x8] sm:$0xff]  ;;  %2245 = vmatprep.subr.bf16.mxu0 %v2244_v45  ;;  %v1412_v45 = vld [vmem:[#allocation5 + $0x780] sm:$0xff] }
 0x29e   : > { %2173 = vmatprep.subr.bf16.mxu1 %v2172_v59  ;;  %v1531_v59 = vld [vmem:[%s2890_s4 + $0x90] sm:$0xff]  ;;  %v2246_v50 = vpack.c.bf16 %v1514_v46, %v1513_v43 }
 0x29f   : > { %v2248_v51 = vpack.c.bf16 %v1532_v47, %v1531_v59  ;;  %v1414_v46 = vld [vmem:[#allocation5 + $0x790] sm:$0xff]  ;;  %v1417_v59 = vld [vmem:[#allocation5 + $0x7a8] sm:$0xff]  ;;  %v1419_v47 = vld [vmem:[#allocation5 + $0x7b8] sm:$0xff] }
 0x2a0   : > { %2247 = vmatpush3.bf16.msra.mxu0 %v2246_v50  ;;  %v2232_v50 = vpack.c.bf16 %v1419_v47, %v1417_v59 }
 0x2a1   : > { %2175 = vmatpush1.bf16.msra.mxu1 %v2174_v52  ;;  %v1515_v52 = vld [vmem:[%s2890_s4 + $0x10] sm:$0xff]  ;;  %2249 = vmatprep.subr.bf16.mxu0 %v2248_v51  ;;  %v1416_v51 = vld [vmem:[#allocation5 + $0x7a0] sm:$0xff] }
 0x2a2   : > { %2177 = vmatprep.subr.bf16.mxu1 %v2176_v53  ;;  %v1516_v53 = vld [vmem:[%s2890_s4 + $0x18] sm:$0xff] }
 0x2a5   : > { %2179 = vmatpush1.bf16.msra.mxu1 %v2178_v57  ;;  %v2250_v57 = vpack.c.bf16 %v1516_v53, %v1515_v52  ;;  %v1418_v52 = vld [vmem:[#allocation5 + $0x7b0] sm:$0xff]  ;;  %v1421_v53 = vld [vmem:[#allocation5 + $0x7c8] sm:$0xff] }
 0x2a6   : > { %2181 = vmatprep.subr.bf16.mxu1 %v2180_v58  ;;  %v2210_v58 = vpack.c.bf16 %v1318_v40, %v1316_v39  ;;  %v1410_v39 = vld [vmem:[#allocation5 + $0x770] sm:$0xff]  ;;  %v1413_v40 = vld [vmem:[#allocation5 + $0x788] sm:$0xff]  ;;  %v2234_v54 = vpack.c.bf16 %v1418_v52, %v1416_v51  ;;  %v2236_v55 = vpack.c.bf16 %v1423_v8, %v1421_v53 }
 0x2a7   : > { %2251 = vmatpush3.bf16.msra.mxu0 %v2250_v57  ;;  %v2226_v43 = vpack.c.bf16 %v1410_v39, %v1408_v38  ;;  %v1422_v57 = vld [vmem:[#allocation5 + $0x7d0] sm:$0xff] }
 0x2a8   : > { %1279 = vmatmul.mubr.f32.vlgmr.msra.gmra.mrb[0].mxu1 %v1212_v0  ;;  %v1398_v0 = vld [vmem:[#allocation5 + $0x710] sm:$0xff]  ;;  %2253 = vmatprep.subr.bf16.mxu0 %v2252_v60  ;;  %v1427_v60 = vld [vmem:[#allocation5 + $0x7f8] sm:$0xff]  ;;  %v2238_v61 = vpack.c.bf16 %v1422_v57, %v1420_v56 }
 0x2a9   : > { %2183 = vmatpush1.bf16.msra.mxu1 %v2182_v63  ;;  %1386 = vmatprep.mubr.f32.mxu1 %v2492_v23  ;;  %v1396_v63 = vld [vmem:[#allocation5 + $0x700] sm:$0xff] }
 0x2aa   : > { %2185 = vmatprep.subr.bf16.mxu1 %v2184_v1  ;;  %v1401_v1 = vld [vmem:[#allocation5 + $0x728] sm:$0xff] }
 0x2ab   : > { %v2216_v13 = vpack.c.bf16 %v1403_v2, %v1401_v1  ;;  %2255 = vmatpush3.bf16.msra.mxu0 %v2254_v5  ;;  %v1428_v1 = vrot.slane %v2728_v16, 6  ;;  %v1541_v2 = vld [vmem:[%s2890_s4 + $0xe0] sm:$0xff] }
 0x2ac   : > { %v1525_v5 = vld [vmem:[%s2890_s4 + $0x60] sm:$0xff] }
 0x2ad   : > { %2187 = vmatpush1.bf16.msra.mxu1 %v2186_v6  ;;  %v2214_v6 = vpack.c.bf16 %v1398_v0, %v1396_v63  ;;  %v1426_v63 = vld [vmem:[#allocation5 + $0x7f0] sm:$0xff] }
 0x2ae   : > { %2189 = vmatprep.subr.bf16.mxu1 %v2188_v7  ;;  %v1400_v7 = vld [vmem:[#allocation5 + $0x720] sm:$0xff] }
 0x2b1   : > { %2191 = vmatpush1.bf16.msra.mxu1 %v2190_v14  ;;  %v1402_v14 = vld [vmem:[#allocation5 + $0x730] sm:$0xff] }
 0x2b2   : > { %2193 = vmatprep.subr.bf16.mxu1 %v2192_v15  ;;  %v2256_v15 = vpack.c.bf16 %v1536_v4, %v1535_v3  ;;  %v1542_v3 = vld [vmem:[%s2890_s4 + $0xe8] sm:$0xff] }
 0x2b3   : > { %v2268_v4 = vpack.c.bf16 %v1542_v3, %v1541_v2 }
 0x2b4   : > { %2257 = vmatprep.subr.bf16.mxu0 %v2256_v15  ;;  %v1528_v15 = vld [vmem:[%s2890_s4 + $0x78] sm:$0xff] }
 0x2b5   : > { %2195 = vmatpush1.bf16.msra.mxu1 %v2194_v21  ;;  %v2258_v21 = vpack.c.bf16 %v1520_v11, %v1519_v9  ;;  %v1543_v11 = vld [vmem:[%s2890_s4 + $0xf0] sm:$0xff] }
 0x2b6   : > { %2197 = vmatprep.subr.bf16.mxu1 %v2196_v22  ;;  %v2218_v22 = vpack.c.bf16 %v1402_v14, %v1400_v7  ;;  %v1527_v14 = vld [vmem:[%s2890_s4 + $0x70] sm:$0xff] }
 0x2b7   : > { %2259 = vmatpush3.bf16.msra.mxu0 %v2258_v21  ;;  %v2274_v17 = vpack.c.bf16 %v1528_v15, %v1527_v14 }
 0x2b8   : > { %2261 = vmatprep.subr.bf16.mxu0 %v2260_v25 }
 0x2b9   : > { %2199 = vmatpush1.bf16.msra.mxu1 %v2198_v28  ;;  %v2220_v28 = vpack.c.bf16 %v1407_v20, %v1405_v19  ;;  %v2357_v19 = vld [vmem:[%s2891_s5] sm:$0xff]  ;;  %v282_v20 = vld [vmem:[%s2891_s5 + $0x8] sm:$0xff] }
 0x2ba   : > { %2201 = vmatprep.subr.bf16.mxu1 %v2200_v49  ;;  %v1406_v49 = vld [vmem:[#allocation5 + $0x750] sm:$0xff]  ;;  %1546 = vperm.xlu0 %2356, %v2357_v19   ;;  %v1505_v21 = vrot.slane %v2357_v19, 4 }
 0x2bb   : > { %2263 = vmatpush3.bf16.msra.mxu0 %v2262_v32 }
 0x2bd   : > { %2203 = vmatpush1.bf16.msra.mxu1 %v2202_v33  ;;  %v2222_v33 = vpack.c.bf16 %v1406_v49, %v1404_v24  ;;  %v1506_v24 = vrot.slane %v282_v20, 4 }
 0x2be   : > { %2205 = vmatprep.subr.bf16.mxu1 %v2204_v34 }
 0x2c1   : > { %2207 = vmatpush1.bf16.msra.mxu1 %v2206_v44  ;;  %v2228_v44 = vpack.c.bf16 %v1415_v41, %v1413_v40 }
 0x2c2   : > { %2209 = vmatprep.subr.bf16.mxu1 %v2208_v48  ;;  %v2230_v48 = vpack.c.bf16 %v1414_v46, %v1412_v45 }
 0x2c5   : > { %2211 = vmatpush1.bf16.msra.mxu1 %v2210_v58  ;;  %v1425_v58 = vld [vmem:[#allocation5 + $0x7e8] sm:$0xff] }
 0x2c6   : > { %2213 = vmatprep.subr.bf16.mxu1 %v2212_v62  ;;  %v2240_v10 = vpack.c.bf16 %v1427_v60, %v1425_v58  ;;  %v1424_v62 = vld [vmem:[#allocation5 + $0x7e0] sm:$0xff] }
 0x2c7   : > { %v2242_v0 = vpack.c.bf16 %v1426_v63, %v1424_v62 }
 0x2c8   : > { %1387 = vmatmul.mubr.f32.vlgmr.msra.gmra.mrb[0].mxu1 %v1320_v12  ;;  %v1544_v12 = vld [vmem:[%s2890_s4 + $0xf8] sm:$0xff] }
 0x2c9   : > { %2215 = vmatpush1.bf16.msra.mxu1 %v2214_v6  ;;  %1494 = vmatprep.mubr.f32.mxu1 %v2492_v23  ;;  %v1540_v23 = vld [vmem:[%s2890_s4 + $0xd8] sm:$0xff]  ;;  %v1526_v6 = vld [vmem:[%s2890_s4 + $0x68] sm:$0xff] }
 0x2ca   : > { %2217 = vmatprep.subr.bf16.mxu1 %v2216_v13  ;;  %v2264_v34 = vpack.c.bf16 %v1540_v23, %v1539_v29  ;;  %v2270_v16 = vpack.c.bf16 %v1526_v6, %v1525_v5  ;;  %v2272_v13 = vpack.c.bf16 %v1544_v12, %v1543_v11 }
 0x2cc   : > { %2265 = vmatprep.subr.bf16.mxu0 %v2264_v34 }
 0x2cd   : > { %2219 = vmatpush1.bf16.msra.mxu1 %v2218_v22  ;;  %2267 = vmatpush3.bf16.msra.mxu0 %v2266_v42 }
 0x2ce   : > { %2221 = vmatprep.subr.bf16.mxu1 %v2220_v28  ;;  %2269 = vmatprep.subr.bf16.mxu0 %v2268_v4 }
 0x2d1   : > { %2223 = vmatpush1.bf16.msra.mxu1 %v2222_v33  ;;  %2271 = vmatpush3.bf16.msra.mxu0 %v2270_v16 }
 0x2d2   : > { %2225 = vmatprep.subr.bf16.mxu1 %v2224_v37  ;;  %2273 = vmatprep.subr.bf16.mxu0 %v2272_v13 }
 0x2d5   : > { %2227 = vmatpush1.bf16.msra.mxu1 %v2226_v43  ;;  %2275 = vmatpush3.bf16.msra.mxu0 %v2274_v17 }
 0x2d6   : > { %2229 = vmatprep.subr.bf16.mxu1 %v2228_v44 }
 0x2d9   : > { %2231 = vmatpush1.bf16.msra.mxu1 %v2230_v48 }
 0x2da   : > { %2233 = vmatprep.subr.bf16.mxu1 %v2232_v50 }
 0x2dd   : > { %2235 = vmatpush1.bf16.msra.mxu1 %v2234_v54 }
 0x2de   : > { %2237 = vmatprep.subr.bf16.mxu1 %v2236_v55 }
 0x2e1   : > { %2239 = vmatpush1.bf16.msra.mxu1 %v2238_v61 }
 0x2e2   : > { %2241 = vmatprep.subr.bf16.mxu1 %v2240_v10 }
 0x2e5   : > { %2243 = vmatpush1.bf16.msra.mxu1 %v2242_v0 }
 0x2e8   : > { %1495 = vmatmul.mubr.f32.vlgmr.msra.gmra.mrb[0].mxu1 %v1428_v1 }
 0x339   : > { %v1547_v30 = vpop.permute.xlu0 %1546 }
 0x33a   : > { %v1548_v32 = vrot.slane %v1547_v30, 5 }
 0x33b   : > { %v847_v7 = vpop.f32.mrb[8].mxu0 }
 0x33c   : > { %v849_v9 = vpop.f32.mrb[9].mxu0 }
 0x3bb   : > { %v1496_v22 = vpop.f32.mrb[0].mxu1 }
 0x3bc   : > { %v2276_v25 = vadd.f32 %v1496_v22, %v847_v7  ;;  %v1498_v26 = vpop.f32.mrb[1].mxu1 }
 0x3bd   : > { %v2277_v27 = vadd.f32 %v1498_v26, %v849_v9 }
 0x3be   : > { %v1509_v28 = vadd.f32 %v2276_v25, %v1505_v21 }
 0x3bf   : > { %v1510_v49 = vadd.f32 %v2277_v27, %v1506_v24 }
 0x3c0   : > { %v1511_v23 = vmax.f32 %v1509_v28, 0.0 }
 0x3c1   : > { %v1512_v29 = vmax.f32 %v1510_v49, 0.0 }
 0x3c3   : > { %1614 = vmatprep.mubr.f32.mxu0 %v1512_v29 }
 0x3c4   : > { %1615 = vmatmul.mubr.f32.vlgmr.msra.gmra.mrb[10].mxu0 %v1511_v23 }
 0x497   : > { %v1835_v31 = vpop.f32.mrb[10].mxu0 }
 0x498   : > { %v1836_v33 = vpop.f32.mrb[11].mxu0 }
 0x499   : > { %v1837_v34 = vadd.f32 %v1836_v33, %v1835_v31 }
 0x49b   : > { %v1617_v35 = vadd.f32 %v1837_v34, %v1548_v32 }
 0x49d   : > { %1621 = vst.msk [vmem:[%s274_s29] sm:$0x1] %vm1620_vm5, %v1617_v35 }
 0x49e   : > { %2427 = shalt.err (!%p2424_p11)
}
 0x49f   : > { %s2428_s18 = scalar_lea.hbm %s2844_s12, 16  ;;  %s2432_s26 = scalar_lea.hbm %s2892_s6, 32 }
 0x4a0   : > { %p2429_p13 = scmp.ne.s32.totalorder %s2844_s12, %s2428_s18  ;;  %p2433_p6 = scmp.lt.u32.totalorder %s2844_s12, %s2892_s6 }
 0x4a1   : > { %p2434_p9 = scmp.lt.u32.totalorder %s2432_s26, %s2428_s18  ;;  %p2436_p12 = scmp.lt.u32.totalorder %s2428_s18, %s2844_s12 }
 0x4a2   : > { %p2430_p0 = pnand %p2429_p13, %p2905_p1 }
 0x4a3   : > { %p2435_p10 = por %p2434_p9, %p2433_p6 }
 0x4a4   : > { %p2431_p5 = pneg %p2430_p0 }
 0x4a5   : > { %p2437_p2 = por %p2436_p12, %p2435_p10 }
 0x4a7   : > { %p2438_p3 = pnand %p2437_p2, %p2431_p5 }
 0x4a9   : > { %2441 = shalt.err (!%p2438_p3)
}
 0x4aa   : > { %2298 = dma.vmem_to_hbm [thread:$0]  (%p2905_p1), %s2846_s13, 16, %s2844_s12, %s1623_s16  }
 0x4ab PF: > { %p2315_p4 = scmp.ge.s32.totalorder %s2484_s24, 2  ;;  %s1647_s29 = sand.u32 1, %s2472_s21  }
 0x4ac   : > { %p2906_p7 = scmp.ne.s32.totalorder %s2897_s8, 0  ;;  %s1648_s15 = scalar_lea.sflag [#allocation4], %s1647_s29 }
 0x4ae   : > { %p2308_p8 = pnand %p2315_p4, %p2906_p7 }
 0x4b0   : > { %2467 = dma.done.wait (!%p2308_p8), %s1648_s15, 16  }
 0x4b1   : > { %2469 = vsyncadd (!%p2308_p8), %s1648_s15, 4294967280  ;;  %p18_p11 = scmp.ge.s32.totalorder %s2555_s27, 4   ;;  %s2907_s21 = smov %s2476_s22 }
 0x4b2   : > { %s2908_s22 = smov %s2480_s23  ;;  %s2909_s23 = smov %s2566_s30 }
 0x4b3   : > { %s2910_s24 = smov %s2555_s27  ;;  %20 = sbr.rel (!%p18_p11) target bundleno = 5 (0x5), region = 95 }
 0x4ba   :  { %1652 = vsyncpa [#allocation3], 1 }
 0x4bb   :  { %1654 = vsyncpa [#allocation3 + $0x1], 1 }
 0x4bc   :  { %1655 = vsyncpa [#allocation6], 1 }
 0x4bd   :  { %1656 = vsyncpa [#allocation4], 1 }
 0x4be   :  { %1658 = vsyncpa [#allocation4 + $0x1], 1 }

</bundles_post_ra>
